<compile_context>
chip_gen: v6e
topology: v6e:2x2x1
jax: 0.10.0
libtpu: 0.0.40
codegen_flags: <defaults>
</compile_context>

<pallas_src>
import functools

import jax
import jax.numpy as jnp
from jax.experimental import pallas as pl
from jax.experimental.pallas import tpu as pltpu


def _round_up(n, m):
    return (n + m - 1) // m * m


def _default_exp_dtype():
    """bf16 EUP on v6e/v7x halves transcendental pushes; f32 elsewhere."""
    try:
        kind = jax.devices()[0].device_kind.lower()
    except Exception:
        return jnp.float32
    if ("v6" in kind) or ("v7" in kind) or ("7x" in kind):
        return jnp.bfloat16
    return jnp.float32


def _sigmoid(x, exp_dtype):
    """EUP-friendly sigmoid: one exp (optionally bf16) + one approx reciprocal."""
    e = jnp.exp((-x).astype(exp_dtype)).astype(jnp.float32)
    return pl.reciprocal(1.0 + e, approx=True)


def _passcell_kernel(x_ref, h_ref, wx_ref, wh_ref, wo_ref, b_ref,
                     y_ref, hn_ref, *, exp_dtype):
    """One lane tile of the fused PASScell_2_v1 forward.

    x_ref  : (Cin, T) input dtype  -- x columns for T merged (b, l) positions
    h_ref  : (H,  T) input dtype   -- h columns
    wx_ref : (4H, Cin) bf16        -- [[w_conv_x] ; [w_lin_x]]
    wh_ref : (4H, H)  bf16         -- [[w_conv_h] ; [w_lin_h]]
    wo_ref : (3H, H)  bf16         -- w_lin_o
    b_ref  : (4H, 1)  f32          -- [b_conv ; b_lin]
    y_ref  : (H, T)  out dtype
    hn_ref : (H, T)  out dtype
    """
    H = y_ref.shape[0]

    xb = x_ref[...].astype(jnp.bfloat16)
    hb = h_ref[...].astype(jnp.bfloat16)

    # Fused conv + linear(x, h): rows 0:H = conv pre-act, rows H:4H = lin(x, h).
    pre = (jnp.dot(wx_ref[...], xb, preferred_element_type=jnp.float32)
           + jnp.dot(wh_ref[...], hb, preferred_element_type=jnp.float32)
           + b_ref[...])                                           # (4H, T) f32

    o = _sigmoid(pre[0:H, :], exp_dtype)                           # (H, T) f32

    pre2 = pre[H:, :] + jnp.dot(wo_ref[...], o.astype(jnp.bfloat16),
                                preferred_element_type=jnp.float32)
    g = _sigmoid(pre2, exp_dtype)                                  # (3H, T) f32

    m = g[0:H, :]
    og = g[H:2 * H, :]
    hg = g[2 * H:3 * H, :]

    y_ref[...] = og.astype(y_ref.dtype)
    hn_ref[...] = (m + og + hg).astype(hn_ref.dtype)


def _pack_weights(params, Cin, H):
    """Host-side (plain JAX) weight packing; done once, stationary in VMEM."""
    w_conv = params["w_conv"][:, :, 0]                  # (H, Cin+H)
    w_lin = params["w_lin"]                             # (3H, Cin+2H)
    wx = jnp.concatenate([w_conv[:, :Cin], w_lin[:, :Cin]],
                         axis=0).astype(jnp.bfloat16)   # (4H, Cin)
    wh = jnp.concatenate([w_conv[:, Cin:], w_lin[:, Cin + H:]],
                         axis=0).astype(jnp.bfloat16)   # (4H, H)
    wo = w_lin[:, Cin:Cin + H].astype(jnp.bfloat16)     # (3H, H)
    b = jnp.concatenate([params["b_conv"], params["b_lin"]]
                        ).reshape(4 * H, 1).astype(jnp.float32)
    return wx, wh, wo, b


def conv1d_passcell_2_v1(x, cur_state, params, *, tile_n=2048, exp_dtype=None):
    """Matches Conv1d_PASScell_2_v1.forward for kernel_size=1.

    x: (B, Cin, L); cur_state = (c, h) with h: (B, H, L).
    The PyTorch module only supports B == 1 or L == 1; this kernel handles the
    general (B, L) case, which coincides with the module on its valid domain.
    Outputs are produced in x.dtype (bf16 in -> bf16 out).
    """
    c, h = cur_state
    B, Cin, L = x.shape
    H = h.shape[1]

    if params["w_conv"].shape[-1] != 1:
        # TODO(synk): kernel_size > 1 (replicate padding) not implemented.
        raise NotImplementedError("only kernel_size=1 is supported")

    if exp_dtype is None:
        exp_dtype = _default_exp_dtype()
    out_dtype = x.dtype

    wx, wh, wo, b = _pack_weights(params, Cin, H)
    kernel = functools.partial(_passcell_kernel, exp_dtype=exp_dtype)
    w_bytes = (wx.size + wh.size + wo.size) * 2 + b.size * 4
    per_col_flops = 2 * (4 * H * (Cin + H) + 3 * H * H)

    if L >= 128:
        # ---- Path A: 2-D (batch, L-tile) grid, no host-side data movement ---
        l128 = _round_up(L, 128)
        # Ensure >= 2 tiles when B == 1 so both v7x TensorCores get work.
        min_tiles = 2 if (B == 1 and l128 >= 256) else 1
        tiles = max(pl.cdiv(l128, tile_n), min_tiles)
        tl = _round_up(pl.cdiv(l128, tiles), 128)   # slack-minimising tile
        n_lt = pl.cdiv(L, tl)                       # ragged edge block clipped
        grid = (B, n_lt)

        cols = B * n_lt * tl
        bytes_accessed = int((x.size + h.size) * x.dtype.itemsize
                             + 2 * B * H * L * jnp.dtype(out_dtype).itemsize
                             + w_bytes)

        y, h_new = pl.pallas_call(
            kernel,
            out_shape=(jax.ShapeDtypeStruct((B, H, L), out_dtype),
                       jax.ShapeDtypeStruct((B, H, L), out_dtype)),
            grid_spec=pltpu.PrefetchScalarGridSpec(
                num_scalar_prefetch=0,
                grid=grid,
                in_specs=[
                    pl.BlockSpec((None, Cin, tl), lambda bi, li: (bi, 0, li)),
                    pl.BlockSpec((None, H, tl), lambda bi, li: (bi, 0, li)),
                    pl.BlockSpec((4 * H, Cin), lambda bi, li: (0, 0)),
                    pl.BlockSpec((4 * H, H), lambda bi, li: (0, 0)),
                    pl.BlockSpec((3 * H, H), lambda bi, li: (0, 0)),
                    pl.BlockSpec((4 * H, 1), lambda bi, li: (0, 0)),
                ],
                out_specs=[
                    pl.BlockSpec((None, H, tl), lambda bi, li: (bi, 0, li)),
                    pl.BlockSpec((None, H, tl), lambda bi, li: (bi, 0, li)),
                ],
            ),
            compiler_params=pltpu.CompilerParams(
                dimension_semantics=("parallel", "parallel"),
                vmem_limit_bytes=32 * 1024 * 1024),
            cost_estimate=pl.CostEstimate(flops=int(cols * per_col_flops),
                                          transcendentals=int(4 * H * cols),
                                          bytes_accessed=bytes_accessed),
        )(x, h, wx, wh, wo, b)
        return y, (c, h_new)

    # ---- Path B: small L (incl. L == 1) -- fold (B, L) into the lane axis ---
    N = B * L
    xt = jnp.transpose(x, (1, 0, 2)).reshape(Cin, N)
    ht = jnp.transpose(h, (1, 0, 2)).reshape(H, N)

    n128 = _round_up(max(N, 1), 128)
    min_tiles = 2 if n128 >= 256 else 1
    tiles = max(pl.cdiv(n128, tile_n), min_tiles)
    tn = _round_up(pl.cdiv(n128, tiles), 128)       # slack-minimising tile
    n_grid = pl.cdiv(N, tn)
    n_pad = n_grid * tn
    if n_pad != N:
        xt = jnp.pad(xt, ((0, 0), (0, n_pad - N)))
        ht = jnp.pad(ht, ((0, 0), (0, n_pad - N)))

    bytes_accessed = int((xt.size + ht.size) * x.dtype.itemsize
                         + 2 * H * n_pad * jnp.dtype(out_dtype).itemsize
                         + w_bytes)

    y2, h2 = pl.pallas_call(
        kernel,
        out_shape=(jax.ShapeDtypeStruct((H, n_pad), out_dtype),
                   jax.ShapeDtypeStruct((H, n_pad), out_dtype)),
        grid_spec=pltpu.PrefetchScalarGridSpec(
            num_scalar_prefetch=0,
            grid=(n_grid,),
            in_specs=[
                pl.BlockSpec((Cin, tn), lambda i: (0, i)),
                pl.BlockSpec((H, tn), lambda i: (0, i)),
                pl.BlockSpec((4 * H, Cin), lambda i: (0, 0)),
                pl.BlockSpec((4 * H, H), lambda i: (0, 0)),
                pl.BlockSpec((3 * H, H), lambda i: (0, 0)),
                pl.BlockSpec((4 * H, 1), lambda i: (0, 0)),
            ],
            out_specs=[
                pl.BlockSpec((H, tn), lambda i: (0, i)),
                pl.BlockSpec((H, tn), lambda i: (0, i)),
            ],
        ),
        compiler_params=pltpu.CompilerParams(
            dimension_semantics=("parallel",),
            vmem_limit_bytes=32 * 1024 * 1024),
        cost_estimate=pl.CostEstimate(flops=int(n_pad * per_col_flops),
                                      transcendentals=int(4 * H * n_pad),
                                      bytes_accessed=bytes_accessed),
    )(xt, ht, wx, wh, wo, b)

    y = y2[:, :N].reshape(H, B, L).transpose(1, 0, 2)
    h_new = h2[:, :N].reshape(H, B, L).transpose(1, 0, 2)
    return y, (c, h_new)


def init_params(key, input_dim, hidden_dim, kernel_size=1):
    """Deterministic parameter init (uniform, PyTorch Conv1d/Linear-like scaling)."""
    k1, k2, k3, k4 = jax.random.split(key, 4)
    fan_c = float((input_dim + hidden_dim) * kernel_size)
    fan_l = float(input_dim + 2 * hidden_dim)
    sc = 1.0 / jnp.sqrt(fan_c)
    sl = 1.0 / jnp.sqrt(fan_l)
    w_conv = jax.random.uniform(
        k1, (hidden_dim, input_dim + hidden_dim, kernel_size), jnp.float32, -sc, sc)
    b_conv = jax.random.uniform(k2, (hidden_dim,), jnp.float32, -sc, sc)
    w_lin = jax.random.uniform(
        k3, (3 * hidden_dim, input_dim + 2 * hidden_dim), jnp.float32, -sl, sl)
    b_lin = jax.random.uniform(k4, (3 * hidden_dim,), jnp.float32, -sl, sl)
    return {"w_conv": w_conv, "b_conv": b_conv, "w_lin": w_lin, "b_lin": b_lin}


def _reference(x, h, params, H):
    """Pure-JAX f32 reference of the PyTorch forward (kernel_size=1)."""
    comb1 = jnp.concatenate([x, h], axis=1)
    pre1 = (jnp.einsum("oc,bcl->bol", params["w_conv"][:, :, 0], comb1)
            + params["b_conv"][None, :, None])
    o = jax.nn.sigmoid(pre1)
    comb2 = jnp.concatenate([x, o, h], axis=1)
    pre2 = (jnp.einsum("oc,bcl->bol", params["w_lin"], comb2)
            + params["b_lin"][None, :, None])
    g = jax.nn.sigmoid(pre2)
    m, og, hg = g[:, :H], g[:, H:2 * H], g[:, 2 * H:]
    return og, m + og + hg


if __name__ == "__main__":
    key = jax.random.PRNGKey(0)
    Cin, H = 16, 32
    kp, kx1, kh1, kx2, kx3, kh3 = jax.random.split(key, 6)
    params = init_params(kp, Cin, H, kernel_size=1)

    # bf16 MXU operands (+ bf16 exp on v6e/v7x, approx reciprocal), f32 accum:
    # looser tolerance than a pure-f32 reference.
    ATOL, RTOL = 5e-2, 2e-2

    # Case 1: B == 1, L > 1 (the module's "transpose" branch). Path A:
    # 2-D (batch, L-tile) grid with two L tiles (one clipped edge block).
    B, L = 1, 640
    x = jax.random.normal(kx1, (B, Cin, L), jnp.float32)
    h0 = jax.random.normal(kh1, (B, H, L), jnp.float32)
    y, (c_out, h_new) = conv1d_passcell_2_v1(x, (None, h0), params)
    jax.block_until_ready((y, h_new))
    y_ref, h_ref = _reference(x, h0, params, H)
    assert y.shape == (B, H, L) and h_new.shape == (B, H, L)
    assert c_out is None
    assert jnp.allclose(y, y_ref, atol=ATOL, rtol=RTOL)
    assert jnp.allclose(h_new, h_ref, atol=ATOL, rtol=RTOL)

    # Case 2: L == 1, batched (the module's other supported layout);
    # init_hidden-style zero h. Path B (fold-to-lanes).
    B2, L2 = 4, 1
    x2 = jax.random.normal(kx2, (B2, Cin, L2), jnp.float32)
    h02 = jnp.zeros((B2, H, L2), jnp.float32)
    y2, (_, hn2) = conv1d_passcell_2_v1(x2, (None, h02), params)
    jax.block_until_ready((y2, hn2))
    yr2, hr2 = _reference(x2, h02, params, H)
    assert y2.shape == (B2, H, L2)
    assert jnp.allclose(y2, yr2, atol=ATOL, rtol=RTOL)
    assert jnp.allclose(hn2, hr2, atol=ATOL, rtol=RTOL)

    # Case 3: batched + long L (outside the module's squeeze-limited domain but
    # same per-position math): exercises the batched 2-D grid path directly.
    B3, L3 = 2, 256
    x3 = jax.random.normal(kx3, (B3, Cin, L3), jnp.float32)
    h03 = jax.random.normal(kh3, (B3, H, L3), jnp.float32)
    y3, (_, hn3) = conv1d_passcell_2_v1(x3, (None, h03), params)
    jax.block_until_ready((y3, hn3))
    yr3, hr3 = _reference(x3, h03, params, H)
    assert y3.shape == (B3, H, L3)
    assert jnp.allclose(y3, yr3, atol=ATOL, rtol=RTOL)
    assert jnp.allclose(hn3, hr3, atol=ATOL, rtol=RTOL)

    print("KERNEL_OK")
</pallas_src>

<mosaic_0001>
module attributes {stable_mosaic.version = 11 : i64} {
  func.func @_passcell_kernel(%arg0: i32, %arg1: i32, %arg2: memref<1x16x384xf32, #tpu.memory_space<vmem>>, %arg3: memref<1x32x384xf32, #tpu.memory_space<vmem>>, %arg4: memref<128x16xbf16, #tpu.memory_space<vmem>>, %arg5: memref<128x32xbf16, #tpu.memory_space<vmem>>, %arg6: memref<96x32xbf16, #tpu.memory_space<vmem>>, %arg7: memref<128x1xf32, #tpu.memory_space<vmem>>, %arg8: memref<1x32x384xf32, #tpu.memory_space<vmem>>, %arg9: memref<1x32x384xf32, #tpu.memory_space<vmem>>) attributes {dimension_semantics = [#tpu.dimension_semantics<parallel>, #tpu.dimension_semantics<parallel>], iteration_bounds = array<i64: 1, 2>, scalar_prefetch = 0 : i64, scratch_operands = 0 : i64, tpu.core_type = #tpu.core_type<tc>, window_params = [{transform_indices = @transform_0, window_bounds = array<i64: 1, 16, 384>}, {transform_indices = @transform_1, window_bounds = array<i64: 1, 32, 384>}, {pipeline_mode = #tpu.pipeline_mode<synchronous>, transform_indices = @transform_2, window_bounds = array<i64: 128, 16>}, {pipeline_mode = #tpu.pipeline_mode<synchronous>, transform_indices = @transform_3, window_bounds = array<i64: 128, 32>}, {pipeline_mode = #tpu.pipeline_mode<synchronous>, transform_indices = @transform_4, window_bounds = array<i64: 96, 32>}, {pipeline_mode = #tpu.pipeline_mode<synchronous>, transform_indices = @transform_5, window_bounds = array<i64: 128, 1>}, {transform_indices = @transform_6, window_bounds = array<i64: 1, 32, 384>}, {transform_indices = @transform_7, window_bounds = array<i64: 1, 32, 384>}]} {
    %c0 = arith.constant 0 : index
    %c0_0 = arith.constant 0 : index
    %c0_1 = arith.constant 0 : index
    %0 = vector.load %arg2[%c0, %c0_0, %c0_1] : memref<1x16x384xf32, #tpu.memory_space<vmem>>, vector<1x16x384xf32>
    %1 = vector.shape_cast %0 : vector<1x16x384xf32> to vector<16x384xf32>
    %2 = arith.truncf %1 : vector<16x384xf32> to vector<16x384xbf16>
    %c0_2 = arith.constant 0 : index
    %c0_3 = arith.constant 0 : index
    %c0_4 = arith.constant 0 : index
    %3 = vector.load %arg3[%c0_2, %c0_3, %c0_4] : memref<1x32x384xf32, #tpu.memory_space<vmem>>, vector<1x32x384xf32>
    %4 = vector.shape_cast %3 : vector<1x32x384xf32> to vector<32x384xf32>
    %5 = arith.truncf %4 : vector<32x384xf32> to vector<32x384xbf16>
    %c0_5 = arith.constant 0 : index
    %c0_6 = arith.constant 0 : index
    %6 = vector.load %arg4[%c0_5, %c0_6] : memref<128x16xbf16, #tpu.memory_space<vmem>>, vector<128x16xbf16>
    %cst = arith.constant dense<0.000000e+00> : vector<128x384xf32>
    %7 = tpu.matmul %6, %2, %cst {dimension_numbers = #tpu.dot_dimension_numbers<[1], [0], [0], [1], [0, 0, 1, 1], [], []>} : vector<128x16xbf16>, vector<16x384xbf16>, vector<128x384xf32> -> vector<128x384xf32>
    %c0_7 = arith.constant 0 : index
    %c0_8 = arith.constant 0 : index
    %8 = vector.load %arg5[%c0_7, %c0_8] : memref<128x32xbf16, #tpu.memory_space<vmem>>, vector<128x32xbf16>
    %cst_9 = arith.constant dense<0.000000e+00> : vector<128x384xf32>
    %9 = tpu.matmul %8, %5, %cst_9 {dimension_numbers = #tpu.dot_dimension_numbers<[1], [0], [0], [1], [0, 0, 1, 1], [], []>} : vector<128x32xbf16>, vector<32x384xbf16>, vector<128x384xf32> -> vector<128x384xf32>
    %10 = arith.addf %7, %9 : vector<128x384xf32>
    %c0_10 = arith.constant 0 : index
    %c0_11 = arith.constant 0 : index
    %11 = vector.load %arg7[%c0_10, %c0_11] : memref<128x1xf32, #tpu.memory_space<vmem>>, vector<128x1xf32>
    %12 = vector.broadcast %11 : vector<128x1xf32> to vector<128x384xf32>
    %13 = arith.addf %10, %12 : vector<128x384xf32>
    %14 = vector.extract_strided_slice %13 {offsets = [0, 0], sizes = [32, 384], strides = [1, 1]} : vector<128x384xf32> to vector<32x384xf32>
    %cst_12 = arith.constant 0.000000e+00 : f32
    %15 = vector.broadcast %cst_12 : f32 to vector<32x384xf32>
    %16 = arith.subf %15, %14 : vector<32x384xf32>
    %17 = math.exp %16 : vector<32x384xf32>
    %cst_13 = arith.constant 1.000000e+00 : f32
    %18 = vector.broadcast %cst_13 : f32 to vector<32x384xf32>
    %19 = arith.addf %18, %17 : vector<32x384xf32>
    %20 = tpu.reciprocal %19 {approx = true} : vector<32x384xf32> -> vector<32x384xf32>
    %21 = vector.extract_strided_slice %13 {offsets = [32, 0], sizes = [96, 384], strides = [1, 1]} : vector<128x384xf32> to vector<96x384xf32>
    %c0_14 = arith.constant 0 : index
    %c0_15 = arith.constant 0 : index
    %22 = vector.load %arg6[%c0_14, %c0_15] : memref<96x32xbf16, #tpu.memory_space<vmem>>, vector<96x32xbf16>
    %23 = arith.truncf %20 : vector<32x384xf32> to vector<32x384xbf16>
    %cst_16 = arith.constant dense<0.000000e+00> : vector<96x384xf32>
    %24 = tpu.matmul %22, %23, %cst_16 {dimension_numbers = #tpu.dot_dimension_numbers<[1], [0], [0], [1], [0, 0, 1, 1], [], []>} : vector<96x32xbf16>, vector<32x384xbf16>, vector<96x384xf32> -> vector<96x384xf32>
    %25 = arith.addf %21, %24 : vector<96x384xf32>
    %cst_17 = arith.constant 0.000000e+00 : f32
    %26 = vector.broadcast %cst_17 : f32 to vector<96x384xf32>
    %27 = arith.subf %26, %25 : vector<96x384xf32>
    %28 = math.exp %27 : vector<96x384xf32>
    %cst_18 = arith.constant 1.000000e+00 : f32
    %29 = vector.broadcast %cst_18 : f32 to vector<96x384xf32>
    %30 = arith.addf %29, %28 : vector<96x384xf32>
    %31 = tpu.reciprocal %30 {approx = true} : vector<96x384xf32> -> vector<96x384xf32>
    %32 = vector.extract_strided_slice %31 {offsets = [0, 0], sizes = [32, 384], strides = [1, 1]} : vector<96x384xf32> to vector<32x384xf32>
    %33 = vector.extract_strided_slice %31 {offsets = [32, 0], sizes = [32, 384], strides = [1, 1]} : vector<96x384xf32> to vector<32x384xf32>
    %34 = vector.extract_strided_slice %31 {offsets = [64, 0], sizes = [32, 384], strides = [1, 1]} : vector<96x384xf32> to vector<32x384xf32>
    %c0_19 = arith.constant 0 : index
    %c0_20 = arith.constant 0 : index
    %c0_21 = arith.constant 0 : index
    %35 = vector.load %arg8[%c0_19, %c0_20, %c0_21] : memref<1x32x384xf32, #tpu.memory_space<vmem>>, vector<1x32x384xf32>
    %36 = vector.shape_cast %35 : vector<1x32x384xf32> to vector<32x384xf32>
    %37 = vector.shape_cast %33 : vector<32x384xf32> to vector<1x32x384xf32>
    tpu.vector_store %arg8[%c0_19, %c0_20, %c0_21], %37 {strides = array<i32>} : memref<1x32x384xf32, #tpu.memory_space<vmem>>, vector<1x32x384xf32>,
    %38 = arith.addf %32, %33 : vector<32x384xf32>
    %39 = arith.addf %38, %34 : vector<32x384xf32>
    %c0_22 = arith.constant 0 : index
    %c0_23 = arith.constant 0 : index
    %c0_24 = arith.constant 0 : index
    %40 = vector.load %arg9[%c0_22, %c0_23, %c0_24] : memref<1x32x384xf32, #tpu.memory_space<vmem>>, vector<1x32x384xf32>
    %41 = vector.shape_cast %40 : vector<1x32x384xf32> to vector<32x384xf32>
    %42 = vector.shape_cast %39 : vector<32x384xf32> to vector<1x32x384xf32>
    tpu.vector_store %arg9[%c0_22, %c0_23, %c0_24], %42 {strides = array<i32>} : memref<1x32x384xf32, #tpu.memory_space<vmem>>, vector<1x32x384xf32>,
    return
  }
  func.func @transform_0(%arg0: i32, %arg1: i32) -> (i32, i32, i32) {
    %c0_i32 = arith.constant 0 : i32
    %c0_i32_0 = arith.constant 0 : i32
    return %arg0, %c0_i32, %arg1 : i32, i32, i32
  }
  func.func @transform_1(%arg0: i32, %arg1: i32) -> (i32, i32, i32) {
    %c0_i32 = arith.constant 0 : i32
    %c0_i32_0 = arith.constant 0 : i32
    return %arg0, %c0_i32, %arg1 : i32, i32, i32
  }
  func.func @transform_2(%arg0: i32, %arg1: i32) -> (i32, i32) {
    %c0_i32 = arith.constant 0 : i32
    %c0_i32_0 = arith.constant 0 : i32
    %c0_i32_1 = arith.constant 0 : i32
    return %c0_i32, %c0_i32_0 : i32, i32
  }
  func.func @transform_3(%arg0: i32, %arg1: i32) -> (i32, i32) {
    %c0_i32 = arith.constant 0 : i32
    %c0_i32_0 = arith.constant 0 : i32
    %c0_i32_1 = arith.constant 0 : i32
    return %c0_i32, %c0_i32_0 : i32, i32
  }
  func.func @transform_4(%arg0: i32, %arg1: i32) -> (i32, i32) {
    %c0_i32 = arith.constant 0 : i32
    %c0_i32_0 = arith.constant 0 : i32
    %c0_i32_1 = arith.constant 0 : i32
    return %c0_i32, %c0_i32_0 : i32, i32
  }
  func.func @transform_5(%arg0: i32, %arg1: i32) -> (i32, i32) {
    %c0_i32 = arith.constant 0 : i32
    %c0_i32_0 = arith.constant 0 : i32
    %c0_i32_1 = arith.constant 0 : i32
    return %c0_i32, %c0_i32_0 : i32, i32
  }
  func.func @transform_6(%arg0: i32, %arg1: i32) -> (i32, i32, i32) {
    %c0_i32 = arith.constant 0 : i32
    %c0_i32_0 = arith.constant 0 : i32
    return %arg0, %c0_i32, %arg1 : i32, i32, i32
  }
  func.func @transform_7(%arg0: i32, %arg1: i32) -> (i32, i32, i32) {
    %c0_i32 = arith.constant 0 : i32
    %c0_i32_0 = arith.constant 0 : i32
    return %arg0, %c0_i32, %arg1 : i32, i32, i32
  }
}

</mosaic_0001>

<bundles_post_ra>
// kernel: tpu_custom_call.1
= control target key start
LH: loop header
LB: loop body
LE: loop exit
PB: predicated region body
PF: predicated region fallthrough
CT: control target
= control target key end

     0   :  { %s4920_s0 = inlined_call_operand.vmem [shape: f32[1,16,640], index: 0, kind: input, shape index: {}]   ;;  %s4921_s1 = inlined_call_operand.vmem [shape: f32[1,32,640], index: 1, kind: input, shape index: {}]   ;;  %s4922_s2 = inlined_call_operand.vmem [shape: bf16[128,16], index: 2, kind: input, shape index: {}]   ;;  %s4923_s3 = inlined_call_operand.vmem [shape: bf16[128,32], index: 3, kind: input, shape index: {}]   ;;  %s4924_s4 = inlined_call_operand.vmem [shape: bf16[96,32], index: 4, kind: input, shape index: {}]   ;;  %s4925_s5 = inlined_call_operand.vmem [shape: f32[128,1], index: 5, kind: input, shape index: {}]   ;;  %s4926_s6 = inlined_call_operand.hbm [shape: f32[1,32,640], index: 6, kind: output, shape index: {0}]   ;;  %s4927_s7 = inlined_call_operand.hbm [shape: f32[1,32,640], index: 7, kind: output, shape index: {1}]  }
   0x1   :  { %4934 = sst [smem:[#allocation27_spill]] %s4920_s0 }
   0x2   :  { %4935 = sst [smem:[#allocation28_spill]] %s4927_s7 }
   0x3   :  { %13 = vsyncpa [#allocation5], 0 }
   0x4   :  { %15 = vsyncpa [#allocation5 + $0x1], 0 }
   0x5   :  { %16 = vsyncpa [#allocation7], 0 }
   0x6   :  { %18 = vsyncpa [#allocation7 + $0x1], 0  ;;  %s4013_s24 = smov 0   ;;  %s4015_s25 = smov 0  }
   0x7   :  { %s4017_s26 = smov 0   ;;  %s4019_s27 = smov 0  }
   0x8   :  { %s4021_s28 = smov 0   ;;  %s4023_s29 = smov 0  }
   0x9 LB: > { %4936 = sst [smem:[#allocation10_spill]] %s3876_s24  ;;  %s2879_s30 = sadd.s32 4294967295, %s3896_s29   ;;  %s3896_s29 = sphi %s4023_s29, %s24_s29   ;;  %s3892_s28 = sphi %s4021_s28, %s4985_s28   ;;  %s3888_s27 = sphi %s4019_s27, %s4984_s27   ;;  %s3884_s26 = sphi %s4017_s26, %s4983_s26   ;;  %s3880_s25 = sphi %s4015_s25, %s4982_s25   ;;  %s3876_s24 = sphi %s4013_s24, %s4981_s24  }
   0xa   : > { %s2880_s8 = sadd.s32 4294967294, %s3896_s29   ;;  %s33_s9 = sadd.s32 1, %s3892_s28 }
   0xb   : > { %s45_s10 = sadd.s32 1, %s3884_s26  ;;  %p34_p0 = scmp.ge.s32.totalorder %s33_s9, 2 }
   0xc   : > { %p52_p1 = scmp.ne.s32.totalorder %s3884_s26, %s3880_s25  ;;  %p53_p2 = scmp.eq.s32.totalorder %s3896_s29, 0 }
   0xd   : > { %p196_p3 = scmp.eq.s32.totalorder %s2879_s30, 1  ;;  %s4987_s9 = smov (%p34_p0, %s33_s9), 0 }
   0xe   : > { %4937 = sst [smem:[#allocation11_spill]] %s4987_s9  ;;  %p4052_p4 = por %p53_p2, %p52_p1 }
   0xf   : > { %p4056_p5 = por %p196_p3, %p52_p1  ;;  %s41_s13 = ssub.s32 %s3892_s28, %s4987_s9 }
  0x10   : > { %p201_p6 = scmp.ne.s32.totalorder %s3880_s25, %s3876_s24  ;;  %p43_p7 = scmp.eq.s32.totalorder %s41_s13, 0 }
  0x11   : > { %p202_p8 = scmp.eq.s32.totalorder %s2880_s8, 1  ;;  %p2882_p10 = scmp.ge.s32.totalorder %s3896_s29, 2 }
  0x12   : > { %s4065_s14 = scalar_select %p43_p7, %s3884_s26, %s45_s10  }
  0x13   : > { %p4067_p9 = por %p202_p8, %p201_p6  ;;  %258 = sbr.rel (%p2882_p10) target bundleno = 170 (0xaa), region = 32 }
  0x14   : > { %4940 = sst [smem:[#allocation12_spill]] %s4065_s14 }
  0x15   : > { %s4941_s15 = scalar_select %p4067_p9, 1, 0 }
  0x17   : > { %4942 = sst [smem:[#allocation13_spill]] %s4941_s15 }
  0x18   : > { %261 = sbr.rel (!%p4052_p4) target bundleno = 95 (0x5f), region = 36  ;;  %s263_s16 = sand.u32 (%p4052_p4), 1, %s3884_s26  }
  0x19   : > { %s266_s17 = smul.u32 (%p4052_p4), 3, %s3892_s28  ;;  %s4943_s0 = sld [smem:[#allocation27_spill]] (%p4052_p4) }
  0x1a   : > { %s3119_s18 = smul.u32 (%p4052_p4), 48, %s263_s16 }
  0x1b   : > { %s267_s19 = ssub.s32 (%p4052_p4), 5, %s266_s17  ;;  %s3018_s20 = smul.u32 (%p4052_p4), 24, %s3892_s28 }
  0x1c   : > { %p268_p11 = scmp.lt.s32.totalorder (%p4052_p4), %s267_s19, 3  ;;  %s4086_s10 = scalar_lea.vmem (%p4052_p4), [#allocation2], %s3119_s18  }
  0x1e   : > { %s4989_s19 = smov (!%p268_p11, %s267_s19), 3 }
  0x1f   : > { %s4082_s23 = scalar_lea.vmem %s4943_s0, %s3018_s20   ;;  %s2883_s30 = sshll.u32 %s4989_s19, 8 }
  0x20   : > { %s4084_s8 = sshll.u32 %s4989_s19, 3  ;;  %p2887_p12 = scmp.eq.s32.totalorder %s2883_s30, 0 }
  0x21   : > { %p280_p13 = scmp.lt.u32.totalorder (!%p2887_p12), %s4084_s8, 8 }
  0x22   : > { %279 = sbr.rel (%p2887_p12) target bundleno = 95 (0x5f), region = 40 }
  0x27   : > { %283 = sbr.rel (%p280_p13) target bundleno = 86 (0x56), region = 44  ;;  %s4090_s13 = sand.u32 (!%p280_p13), 7, %s4084_s8  }
  0x28   : > { %p302_p0 = scmp.eq.s32.totalorder (!%p280_p13), %s4090_s13, 0  ;;  %p2888_p1 = scmp.ne.s32.totalorder (!%p280_p13), %s4090_s13, 0 }
  0x2c   : > { %305 = sbr.rel (%p2888_p1) target bundleno = 62 (0x3e), region = 59  ;;  %s306_s16 = sshrl.u32 (!%p2888_p1), %s4084_s8, 3 }
  0x2d   : > { %s307_s17 = sshrl.u32 (!%p2888_p1), %s306_s16, 5  ;;  %s4095_s18 = sand.u32 (!%p2888_p1), 31, %s306_s16  }
  0x2e   : > { %s3019_s19 = sshll.u32 (!%p2888_p1), %s307_s17, 12  ;;  %p2895_p2 = scmp.le.s32.totalorder (!%p2888_p1), %s4095_s18, 0 }
  0x2f   : > { %s458_s20 = sshra.s32 (!%p2888_p1), %s3019_s19, 4 }
  0x30   : > { %s4098_s21 = scalar_lea.vmem (!%p2888_p1), %s4082_s23, %s458_s20   ;;  %s462_s22 = scalar_lea.vmem (!%p2888_p1), %s4086_s10, %s458_s20 [#allocation2]  }
  0x31   : > { %2742 = sbr.rel (%p2895_p2) target bundleno = 62 (0x3e), region = 282  ;;  %s3898_s30 = smov (!%p2895_p2), %s462_s22  }
  0x32   : > { %s3902_s0 = smov (!%p2895_p2), %s4098_s21   ;;  %s3906_s9 = smov (!%p2895_p2), 0  }
  0x33   : > { %s3910_s14 = smov (!%p2895_p2), 0  }
  0x36 LB: >> { %v474_v0 = vld [vmem:[%s3904_s0] sm:$0xff]  ;;  %v476_v1 = vld [vmem:[%s3904_s0 + $0x28] sm:$0xff]  ;;  %s478_s16 = sadd.s32 1, %s3908_s9  ;;  %s468_s14 = sadd.s32 1, %s3912_s14   ;;  %s3912_s14 = sphi %s3910_s14, %s468_s14   ;;  %s3908_s9 = sphi %s3906_s9, %s3907_s9   ;;  %s3904_s0 = sphi %s3902_s0, %s483_s0   ;;  %s3900_s30 = sphi %s3898_s30, %s484_s30  }
  0x37   : >> { %475 = vst [vmem:[%s3900_s30] sm:$0xff] %v474_v0  ;;  %477 = vst [vmem:[%s3900_s30 + $0x18] sm:$0xff] %v476_v1  ;;  %p479_p3 = scmp.ge.s32.totalorder %s478_s16, %s4095_s18  ;;  %p467_p6 = scmp.ge.s32.totalorder %s468_s14, %s4095_s18 }
  0x39   : >> { %s4991_s16 = smov (%p479_p3, %s478_s16), 0  ;;  %470 = sbr.rel (!%p467_p6) target bundleno = 54 (0x36), region = 288 }
  0x3a   : >> { %s2896_s17 = sshll.u32 %s4991_s16, 3  ;;  %s3907_s9 = smov %s4991_s16  }
  0x3b   : >> { %s483_s0 = scalar_lea.vmem %s4098_s21, %s2896_s17   ;;  %s484_s30 = scalar_lea.vmem %s462_s22, %s2896_s17 [#allocation2]  }
  0x3e PF: > { %487 = sbr.rel (%p302_p0) target bundleno = 86 (0x56), region = 77  ;;  %s489_s9 = ssub.s32 (!%p302_p0), %s4084_s8, %s4090_s13 }
  0x3f   : > { %s493_s19 = sshrl.u32 (!%p302_p0), %s4084_s8, 3  ;;  %s4112_s20 = scalar_lea.vmem (!%p302_p0), %s4082_s23, %s489_s9 }
  0x40   : > { %s4115_s0 = scalar_lea.vmem (!%p302_p0), %s4086_s10, %s489_s9 [#allocation2]  ;;  %s494_s14 = sshrl.u32 (!%p302_p0), %s493_s19, 5 }
  0x41   : > { %s4117_s30 = sand.u32 (!%p302_p0), 31, %s493_s19   ;;  %s3021_s18 = sshll.u32 (!%p302_p0), %s494_s14, 12 }
  0x42   : > { %s645_s21 = sshra.s32 (!%p302_p0), %s3021_s18, 4  ;;  %p2904_p7 = scmp.le.s32.totalorder (!%p302_p0), %s4117_s30, 0 }
  0x43   : > { %s4120_s22 = scalar_lea.vmem %s4082_s23, %s645_s21   ;;  %s649_s16 = scalar_lea.vmem %s4086_s10, %s645_s21 [#allocation2]  }
  0x44   : > { %2770 = sbr.rel (%p2904_p7) target bundleno = 81 (0x51), region = 304  ;;  %s3914_s17 = smov (!%p2904_p7), %s649_s16  }
  0x45   : > { %s3918_s15 = smov (!%p2904_p7), %s4120_s22   ;;  %s3922_s24 = smov (!%p2904_p7), 0  }
  0x46   : > { %s3926_s7 = smov (!%p2904_p7), 0  }
  0x49 LB: >> { %v661_v2 = vld [vmem:[%s3920_s15] sm:$0xff]  ;;  %v663_v3 = vld [vmem:[%s3920_s15 + $0x28] sm:$0xff]  ;;  %s665_s9 = sadd.s32 1, %s3924_s24  ;;  %s655_s7 = sadd.s32 1, %s3928_s7   ;;  %s3928_s7 = sphi %s3926_s7, %s655_s7   ;;  %s3924_s24 = sphi %s3922_s24, %s3923_s24   ;;  %s3920_s15 = sphi %s3918_s15, %s670_s15   ;;  %s3916_s17 = sphi %s3914_s17, %s671_s17  }
  0x4a   : >> { %662 = vst [vmem:[%s3916_s17] sm:$0xff] %v661_v2  ;;  %664 = vst [vmem:[%s3916_s17 + $0x18] sm:$0xff] %v663_v3  ;;  %p666_p8 = scmp.ge.s32.totalorder %s665_s9, %s4117_s30  ;;  %p654_p11 = scmp.ge.s32.totalorder %s655_s7, %s4117_s30 }
  0x4c   : >> { %s4993_s9 = smov (%p666_p8, %s665_s9), 0  ;;  %657 = sbr.rel (!%p654_p11) target bundleno = 73 (0x49), region = 310 }
  0x4d   : >> { %s2905_s19 = sshll.u32 %s4993_s9, 3  ;;  %s3923_s24 = smov %s4993_s9  }
  0x4e   : >> { %s670_s15 = scalar_lea.vmem %s4120_s22, %s2905_s19   ;;  %s671_s17 = scalar_lea.vmem %s649_s16, %s2905_s19 [#allocation2]  }
  0x51 PF: > { %s3962_s14 = smov 1  }
  0x52   : > { %s672_s24 = sshll.u32 %s3962_s14, %s4090_s13 }
  0x53   : > { %s2907_s18 = sadd.s32 4294967295, %s672_s24 }
  0x54   : > { %v682_v4 = vld [vmem:[%s4112_s20] sm:%s2907_s18]  ;;  %v684_v5 = vld [vmem:[%s4112_s20 + $0x28] sm:%s2907_s18] }
  0x55   : > { %683 = vst [vmem:[%s4115_s0] sm:%s2907_s18] %v682_v4  ;;  %685 = vst [vmem:[%s4115_s0 + $0x18] sm:%s2907_s18] %v684_v5 }
  0x56 PF: > { %p2908_p12 = scmp.ge.u32.totalorder %s4084_s8, 8 }
  0x57   : > { %s3963_s7 = smov (!%p2908_p12), 1  }
  0x58   : > { %286 = sbr.rel (%p2908_p12) target bundleno = 95 (0x5f), region = 48  ;;  %s287_s15 = sshll.u32 (!%p2908_p12), %s3963_s7, %s4084_s8 }
  0x59   : > { %s2909_s30 = sadd.s32 (!%p2908_p12), 4294967295, %s287_s15 }
  0x5d   : > { %v297_v6 = vld [vmem:[%s4082_s23] sm:%s2909_s30]  ;;  %v299_v7 = vld [vmem:[%s4082_s23 + $0x28] sm:%s2909_s30] }
  0x5e   : > { %298 = vst [vmem:[%s4086_s10] sm:%s2909_s30] %v297_v6  ;;  %300 = vst [vmem:[%s4086_s10 + $0x18] sm:%s2909_s30] %v299_v7 }
  0x5f PF: > { %689 = sbr.rel (!%p4052_p4) target bundleno = 170 (0xaa), region = 102  ;;  %s691_s13 = sand.u32 (%p4052_p4), 1, %s3884_s26  }
  0x60   : > { %s694_s20 = smul.u32 (%p4052_p4), 3, %s3892_s28 }
  0x61   : > { %s3120_s0 = smul.u32 (%p4052_p4), 96, %s691_s13 }
  0x62   : > { %s695_s21 = ssub.s32 (%p4052_p4), 5, %s694_s20  ;;  %s3023_s22 = smul.u32 (%p4052_p4), 24, %s3892_s28 }
  0x63   : > { %p696_p13 = scmp.lt.s32.totalorder (%p4052_p4), %s695_s21, 3  ;;  %s4151_s11 = scalar_lea.vmem (%p4052_p4), [#allocation3], %s3120_s0  }
  0x64   : > { %s4147_s23 = scalar_lea.vmem %s4921_s1, %s3023_s22  }
  0x65   : > { %s4995_s21 = smov (!%p696_p13, %s695_s21), 3 }
  0x66   : > { %s2910_s10 = sshll.u32 %s4995_s21, 9  ;;  %s4149_s17 = sshll.u32 %s4995_s21, 3 }
  0x67   : > { %p2914_p4 = scmp.eq.s32.totalorder %s2910_s10, 0 }
  0x68   : > { %p708_p0 = scmp.lt.u32.totalorder (!%p2914_p4), %s4149_s17, 8 }
  0x69   : > { %707 = sbr.rel (%p2914_p4) target bundleno = 170 (0xaa), region = 106 }
  0x6e   : > { %711 = sbr.rel (%p708_p0) target bundleno = 159 (0x9f), region = 110  ;;  %s4155_s9 = sand.u32 (!%p708_p0), 7, %s4149_s17  }
  0x6f   : > { %p734_p1 = scmp.eq.s32.totalorder (!%p708_p0), %s4155_s9, 0  ;;  %p2915_p2 = scmp.ne.s32.totalorder (!%p708_p0), %s4155_s9, 0 }
  0x73   : > { %737 = sbr.rel (%p2915_p2) target bundleno = 133 (0x85), region = 125  ;;  %s738_s19 = sshrl.u32 (!%p2915_p2), %s4149_s17, 3 }
  0x74   : > { %s739_s14 = sshrl.u32 (!%p2915_p2), %s738_s19, 4  ;;  %s4160_s24 = sand.u32 (!%p2915_p2), 15, %s738_s19  }
  0x75   : > { %s3024_s18 = sshll.u32 (!%p2915_p2), %s739_s14, 11  ;;  %p2922_p3 = scmp.le.s32.totalorder (!%p2915_p2), %s4160_s24, 0 }
  0x76   : > { %s890_s7 = sshra.s32 (!%p2915_p2), %s3024_s18, 4 }
  0x77   : > { %s4163_s15 = scalar_lea.vmem (!%p2915_p2), %s4147_s23, %s890_s7   ;;  %s4166_s30 = scalar_lea.vmem (!%p2915_p2), %s4151_s11, %s890_s7 [#allocation3]  }
  0x78   : > { %2798 = sbr.rel (%p2922_p3) target bundleno = 133 (0x85), region = 326  ;;  %s4944_s13 = smov (!%p2922_p3), %s4166_s30 }
  0x79   : > { %s4945_s20 = smov (!%p2922_p3), %s4163_s15  ;;  %s4175_s0 = smov (!%p2922_p3), 0  }
  0x7a   : > { %s3942_s21 = smov (!%p2922_p3), 0  }
  0x7d LB: >> { %v906_v8 = vld [vmem:[%s3936_s20] sm:$0xff]  ;;  %v908_v9 = vld [vmem:[%s3936_s20 + $0x28] sm:$0xff]  ;;  %v910_v10 = vld [vmem:[%s3936_s20 + $0x50] sm:$0xff]  ;;  %s914_s22 = sadd.s32 1, %s3940_s0  ;;  %s900_s21 = sadd.s32 1, %s3944_s21   ;;  %s3944_s21 = sphi %s3942_s21, %s900_s21   ;;  %s3940_s0 = sphi %s4175_s0, %s4946_s0   ;;  %s3936_s20 = sphi %s4945_s20, %s919_s20   ;;  %s3932_s13 = sphi %s4944_s13, %s920_s13  }
  0x7e   : >> { %907 = vst [vmem:[%s3932_s13] sm:$0xff] %v906_v8  ;;  %909 = vst [vmem:[%s3932_s13 + $0x18] sm:$0xff] %v908_v9  ;;  %v912_v11 = vld [vmem:[%s3936_s20 + $0x78] sm:$0xff]  ;;  %p915_p6 = scmp.ge.s32.totalorder %s914_s22, %s4160_s24  ;;  %p899_p7 = scmp.ge.s32.totalorder %s900_s21, %s4160_s24 }
  0x7f   : >> { %911 = vst [vmem:[%s3932_s13 + $0x30] sm:$0xff] %v910_v10  ;;  %913 = vst [vmem:[%s3932_s13 + $0x48] sm:$0xff] %v912_v11 }
  0x80   : >> { %s4997_s22 = smov (%p915_p6, %s914_s22), 0  ;;  %902 = sbr.rel (!%p899_p7) target bundleno = 125 (0x7d), region = 332 }
  0x81   : >> { %s2923_s8 = sshll.u32 %s4997_s22, 3  ;;  %s4946_s0 = smov %s4997_s22 }
  0x82   : >> { %s919_s20 = scalar_lea.vmem %s4163_s15, %s2923_s8   ;;  %s920_s13 = scalar_lea.vmem %s4166_s30, %s2923_s8 [#allocation3]  }
  0x85 PF: > { %923 = sbr.rel (%p734_p1) target bundleno = 159 (0x9f), region = 143  ;;  %s925_s16 = ssub.s32 (!%p734_p1), %s4149_s17, %s4155_s9 }
  0x86   : > { %s929_s10 = sshrl.u32 (!%p734_p1), %s4149_s17, 3  ;;  %s4196_s19 = scalar_lea.vmem (!%p734_p1), %s4147_s23, %s925_s16 }
  0x87   : > { %s4199_s14 = scalar_lea.vmem (!%p734_p1), %s4151_s11, %s925_s16 [#allocation3]  ;;  %s930_s18 = sshrl.u32 (!%p734_p1), %s929_s10, 4 }
  0x88   : > { %s4201_s7 = sand.u32 (!%p734_p1), 15, %s929_s10   ;;  %s3026_s24 = sshll.u32 (!%p734_p1), %s930_s18, 11 }
  0x89   : > { %s1081_s15 = sshra.s32 (!%p734_p1), %s3026_s24, 4  ;;  %p2931_p8 = scmp.le.s32.totalorder (!%p734_p1), %s4201_s7, 0 }
  0x8a   : > { %s4204_s30 = scalar_lea.vmem %s4147_s23, %s1081_s15   ;;  %s4207_s13 = scalar_lea.vmem %s4151_s11, %s1081_s15 [#allocation3]  }
  0x8b   : > { %2826 = sbr.rel (%p2931_p8) target bundleno = 152 (0x98), region = 348  ;;  %s4947_s20 = smov (!%p2931_p8), %s4207_s13 }
  0x8c   : > { %s4948_s0 = smov (!%p2931_p8), %s4204_s30  ;;  %s3954_s21 = smov (!%p2931_p8), 0  }
  0x8d   : > { %s3958_s22 = smov (!%p2931_p8), 0  }
  0x90 LB: >> { %v1097_v12 = vld [vmem:[%s3952_s0] sm:$0xff]  ;;  %v1099_v13 = vld [vmem:[%s3952_s0 + $0x28] sm:$0xff]  ;;  %v1101_v14 = vld [vmem:[%s3952_s0 + $0x50] sm:$0xff]  ;;  %s1105_s8 = sadd.s32 1, %s3956_s21  ;;  %s1091_s22 = sadd.s32 1, %s3960_s22   ;;  %s3960_s22 = sphi %s3958_s22, %s1091_s22   ;;  %s3956_s21 = sphi %s3954_s21, %s3955_s21   ;;  %s3952_s0 = sphi %s4948_s0, %s1110_s0   ;;  %s3948_s20 = sphi %s4947_s20, %s1111_s20  }
  0x91   : >> { %1098 = vst [vmem:[%s3948_s20] sm:$0xff] %v1097_v12  ;;  %1100 = vst [vmem:[%s3948_s20 + $0x18] sm:$0xff] %v1099_v13  ;;  %v1103_v15 = vld [vmem:[%s3952_s0 + $0x78] sm:$0xff]  ;;  %p1106_p11 = scmp.ge.s32.totalorder %s1105_s8, %s4201_s7  ;;  %p1090_p12 = scmp.ge.s32.totalorder %s1091_s22, %s4201_s7 }
  0x92   : >> { %1102 = vst [vmem:[%s3948_s20 + $0x30] sm:$0xff] %v1101_v14  ;;  %1104 = vst [vmem:[%s3948_s20 + $0x48] sm:$0xff] %v1103_v15 }
  0x93   : >> { %s4999_s8 = smov (%p1106_p11, %s1105_s8), 0  ;;  %1093 = sbr.rel (!%p1090_p12) target bundleno = 144 (0x90), region = 354 }
  0x94   : >> { %s2932_s16 = sshll.u32 %s4999_s8, 3  ;;  %s3955_s21 = smov %s4999_s8  }
  0x95   : >> { %s1110_s0 = scalar_lea.vmem %s4204_s30, %s2932_s16   ;;  %s1111_s20 = scalar_lea.vmem %s4207_s13, %s2932_s16 [#allocation3]  }
  0x98 PF: > { %s3964_s10 = smov 1  }
  0x99   : > { %s1112_s18 = sshll.u32 %s3964_s10, %s4155_s9 }
  0x9a   : > { %s2934_s24 = sadd.s32 4294967295, %s1112_s18 }
  0x9b   : > { %v1122_v16 = vld [vmem:[%s4196_s19] sm:%s2934_s24]  ;;  %v1124_v17 = vld [vmem:[%s4196_s19 + $0x28] sm:%s2934_s24] }
  0x9c   : > { %1123 = vst [vmem:[%s4199_s14] sm:%s2934_s24] %v1122_v16  ;;  %1125 = vst [vmem:[%s4199_s14 + $0x18] sm:%s2934_s24] %v1124_v17 }
  0x9d   : > { %v1126_v18 = vld [vmem:[%s4196_s19 + $0x50] sm:%s2934_s24]  ;;  %v1128_v19 = vld [vmem:[%s4196_s19 + $0x78] sm:%s2934_s24] }
  0x9e   : > { %1127 = vst [vmem:[%s4199_s14 + $0x30] sm:%s2934_s24] %v1126_v18  ;;  %1129 = vst [vmem:[%s4199_s14 + $0x48] sm:%s2934_s24] %v1128_v19 }
  0x9f PF: > { %p2935_p13 = scmp.ge.u32.totalorder %s4149_s17, 8 }
  0xa0   : > { %s3965_s7 = smov (!%p2935_p13), 1  }
  0xa1   : > { %714 = sbr.rel (%p2935_p13) target bundleno = 170 (0xaa), region = 114  ;;  %s715_s9 = sshll.u32 (!%p2935_p13), %s3965_s7, %s4149_s17 }
  0xa2   : > { %s2936_s15 = sadd.s32 (!%p2935_p13), 4294967295, %s715_s9 }
  0xa6   : > { %v725_v20 = vld [vmem:[%s4147_s23] sm:%s2936_s15]  ;;  %v727_v21 = vld [vmem:[%s4147_s23 + $0x28] sm:%s2936_s15] }
  0xa7   : > { %726 = vst [vmem:[%s4151_s11] sm:%s2936_s15] %v725_v20  ;;  %728 = vst [vmem:[%s4151_s11 + $0x18] sm:%s2936_s15] %v727_v21 }
  0xa8   : > { %v729_v22 = vld [vmem:[%s4147_s23 + $0x50] sm:%s2936_s15]  ;;  %v731_v23 = vld [vmem:[%s4147_s23 + $0x78] sm:%s2936_s15] }
  0xa9   : > { %730 = vst [vmem:[%s4151_s11 + $0x30] sm:%s2936_s15] %v729_v22  ;;  %732 = vst [vmem:[%s4151_s11 + $0x48] sm:%s2936_s15] %v731_v23 }
  0xaa PF: > { %p2937_p4 = scmp.ge.s32.totalorder %s3896_s29, 1  ;;  %p1132_p0 = scmp.lt.s32.totalorder %s3896_s29, 3 }
  0xac   : > { %p1133_p1 = pnand %p2937_p4, %p1132_p0 }
  0xae   : > { %1136 = sbr.rel (%p1133_p1) target bundleno = 853 (0x355), region = 168 }
  0xb3   : > { %s4248_s17 = sand.u32 1, %s3880_s25   ;;  %v4932_v24 = vmov 0   ;;  %v3448_v39 = vld [vmem:[%s4923_s3] sm:$0xff]   ;;  %v4265_v43 = vld [vmem:[%s4923_s3 + $0x38] sm:$0xff]   ;;  %vm1306_vm0 = vcmask 261120   ;;  %v3450_v53 = vld [vmem:[%s4923_s3 + $0x8] sm:$0xff]  }
  0xb4   : > { %s4251_s19 = smul.u32 96, %s4248_s17  ;;  %1363 = vmatprep.mubr.bf16.mxu0 %v4932_v24  ;;  %1433 = vmatprep.mubr.bf16.mxu1 %v4932_v24  ;;  %v3451_v54 = vld [vmem:[%s4923_s3 + $0x10] sm:$0xff]   ;;  %v1816_v57 = vld [vmem:[%s4925_s5] sm:$0xff]  ;;  %v1819_v58 = vld [vmem:[%s4925_s5 + $0x18] sm:$0xff]  ;;  %vm1581_vm1 = vcmask 130048   ;;  %s2530_s24 = scalar_lea.sflag [#allocation7], %s4248_s17 }
  0xb5   : > { %3446 = vset.pattern.permute.xlu0 %v4932_v24  ;;  %3447 = vset.pattern.permute.xlu1 %v4932_v24  ;;  %s3121_s11 = smul.u32 48, %s4248_s17  ;;  %v1818_v56 = vld [vmem:[%s4925_s5 + $0x10] sm:$0xff]  ;;  %v3452_v59 = vld [vmem:[%s4923_s3 + $0x18] sm:$0xff]   ;;  %v3453_v60 = vld [vmem:[%s4923_s3 + $0x20] sm:$0xff]  }
  0xb6   : > { %s1148_s23 = scalar_lea.vmem [#allocation3], %s4251_s19  ;;  %1844 = vperm.xlu0 %3446, %v1818_v56   ;;  %1834 = vperm.xlu1 %3447, %v1816_v57   ;;  %v1817_v61 = vld [vmem:[%s4925_s5 + $0x8] sm:$0xff]  ;;  %v1820_v62 = vld [vmem:[%s4925_s5 + $0x20] sm:$0xff]  ;;  %v1822_v0 = vld [vmem:[%s4925_s5 + $0x30] sm:$0xff]  ;;  %s4734_s10 = scalar_lea.vmem [#allocation4], %s4251_s19 }
  0xb7   : > { %v1223_v25 = vld [vmem:[%s1148_s23 + $0x38] sm:$0xff]  ;;  %v1226_v26 = vld [vmem:[%s1148_s23 + $0x50] sm:$0xff]  ;;  %v1225_v29 = vld [vmem:[%s1148_s23 + $0x48] sm:$0xff]  ;;  %s1141_s0 = scalar_lea.vmem [#allocation2], %s3121_s11  ;;  %s4774_s18 = scalar_lea.vmem [#allocation6], %s4251_s19 }
  0xb8   : > { %v1222_v27 = vld [vmem:[%s1148_s23 + $0x30] sm:$0xff]  ;;  %v1232_v28 = vpack.c.bf16 %v1226_v26, %v1223_v25  ;;  %v1217_v30 = vld [vmem:[%s1148_s23 + $0x8] sm:$0xff]  ;;  %v1220_v31 = vld [vmem:[%s1148_s23 + $0x20] sm:$0xff]  ;;  %s2525_s19 = scalar_lea.sflag [#allocation5], %s4248_s17  ;;  %s2537_s7 = smul.u32 (%p4056_p5), 3, %s3888_s27 }
  0xb9   : > { %v1231_v32 = vpack.c.bf16 %v1225_v29, %v1222_v27  ;;  %v1229_v33 = vpack.c.bf16 %v1220_v31, %v1217_v30  ;;  %v1216_v34 = vld [vmem:[%s1148_s23] sm:$0xff]  ;;  %v1219_v35 = vld [vmem:[%s1148_s23 + $0x18] sm:$0xff]  ;;  %v1218_v41 = vld [vmem:[%s1148_s23 + $0x10] sm:$0xff] }
  0xba   : > { %v1224_v36 = vld [vmem:[%s1148_s23 + $0x40] sm:$0xff]  ;;  %1343 = vmatprep.subr.bf16.mxu0 %v1232_v28  ;;  %3115 = vmatprep.subr.bf16.mxu1 %v1232_v28  ;;  %v1227_v37 = vld [vmem:[%s1148_s23 + $0x58] sm:$0xff]  ;;  %v1228_v38 = vpack.c.bf16 %v1219_v35, %v1216_v34  ;;  %v1221_v42 = vld [vmem:[%s1148_s23 + $0x28] sm:$0xff]  ;;  %s2538_s9 = ssub.s32 (%p4056_p5), 5, %s2537_s7 }
  0xbb   : > { %1344 = vmatpush1.bf16.msra.mxu0 %v1231_v32  ;;  %3117 = vmatpush1.bf16.msra.mxu1 %v1231_v32  ;;  %v1233_v40 = vpack.c.bf16 %v1227_v37, %v1224_v36  ;;  %v1230_v44 = vpack.c.bf16 %v1221_v42, %v1218_v41  ;;  %v1208_v45 = vld [vmem:[%s1141_s0 + $0x8] sm:$0xff]  ;;  %v1211_v46 = vld [vmem:[%s1141_s0 + $0x20] sm:$0xff]  ;;  %v1209_v47 = vld [vmem:[%s1141_s0 + $0x10] sm:$0xff]  ;;  %p2539_p2 = scmp.lt.s32.totalorder (%p4056_p5), %s2538_s9, 3 }
  0xbc   : > { %1345 = vmatprep.subr.bf16.mxu0 %v1229_v33  ;;  %3116 = vmatprep.subr.bf16.mxu1 %v1229_v33  ;;  %v1212_v48 = vld [vmem:[%s1141_s0 + $0x28] sm:$0xff]  ;;  %v1214_v49 = vpack.c.bf16 %v1211_v46, %v1208_v45  ;;  %v1207_v50 = vld [vmem:[%s1141_s0] sm:$0xff]  ;;  %v1210_v52 = vld [vmem:[%s1141_s0 + $0x18] sm:$0xff] }
  0xbd   : > { %v1215_v51 = vpack.c.bf16 %v1212_v48, %v1209_v47  ;;  %v1213_v55 = vpack.c.bf16 %v1210_v52, %v1207_v50  ;;  %1849 = vperm.xlu0 %3446, %v1819_v58   ;;  %v1821_v63 = vld [vmem:[%s4925_s5 + $0x28] sm:$0xff]  ;;  %1839 = vperm.xlu1 %3447, %v1817_v61   ;;  %v1823_v2 = vld [vmem:[%s4925_s5 + $0x38] sm:$0xff]  ;;  %v3455_v3 = vld [vmem:[%s4923_s3 + $0x30] sm:$0xff]  }
  0xbe   : > { %v3454_v1 = vld [vmem:[%s4923_s3 + $0x28] sm:$0xff]   ;;  %v1824_v4 = vld [vmem:[%s4925_s5 + $0x40] sm:$0xff]  ;;  %v1826_v6 = vld [vmem:[%s4925_s5 + $0x50] sm:$0xff] }
  0xbf   : > { %1346 = vmatpush1.bf16.msra.mxu0 %v1228_v38  ;;  %3118 = vmatpush1.bf16.msra.mxu1 %v1228_v38  ;;  %v1825_v5 = vld [vmem:[%s4925_s5 + $0x48] sm:$0xff]  ;;  %v1827_v7 = vld [vmem:[%s4925_s5 + $0x58] sm:$0xff]  ;;  %v1828_v8 = vld [vmem:[%s4925_s5 + $0x60] sm:$0xff] }
  0xc0   : > { %3061 = vmatprep.subr.bf16.mxu1 %v1233_v40  ;;  %3081 = vmatprep.subr.bf16.mxu0 %v1215_v51  ;;  %v1829_v9 = vld [vmem:[%s4925_s5 + $0x68] sm:$0xff]  ;;  %v1830_v10 = vld [vmem:[%s4925_s5 + $0x70] sm:$0xff]  ;;  %v3456_v11 = vld [vmem:[%s4922_s2] sm:$0xff]  }
  0xc1   : > { %1854 = vperm.xlu0 %3446, %v1820_v62   ;;  %1859 = vperm.xlu1 %3447, %v1821_v63   ;;  %v1831_v12 = vld [vmem:[%s4925_s5 + $0x78] sm:$0xff]  ;;  %v3457_v13 = vld [vmem:[%s4922_s2 + $0x8] sm:$0xff]   ;;  %v3458_v14 = vld [vmem:[%s4922_s2 + $0x10] sm:$0xff]  }
  0xc2   : > { %2946 = vmatmul.mubr.msk.bf16.vlgmr.msra.gmra.mxu0 %vm1306_vm0, %v3448_v39  ;;  %2953 = vmatmul.mubr.msk.bf16.vlgmr.msra.gmra.mxu1 %vm1306_vm0, %v4265_v43  ;;  %v3459_v15 = vld [vmem:[%s4922_s2 + $0x18] sm:$0xff]   ;;  %v3460_v16 = vld [vmem:[%s4922_s2 + $0x20] sm:$0xff]   ;;  %v3461_v17 = vld [vmem:[%s4922_s2 + $0x28] sm:$0xff]  }
  0xc3   : > { %3062 = vmatpush3.bf16.msra.mxu1 %v1233_v40  ;;  %1373 = vmatprep.mubr.bf16.mxu0 %v4932_v24  ;;  %v3462_v18 = vld [vmem:[%s4922_s2 + $0x30] sm:$0xff]   ;;  %v3463_v19 = vld [vmem:[%s4922_s2 + $0x38] sm:$0xff]   ;;  %v4409_v20 = vld [vmem:[%s4924_s4] sm:$0xff]  }
  0xc4   : > { %3063 = vmatprep.subr.bf16.mxu1 %v1230_v44  ;;  %3065 = vmatprep.mubr.msk.bf16.mxu1 %vm1306_vm0, %v3448_v39 }
  0xc5   : > { %3082 = vmatpush3.bf16.msra.mxu0 %v1215_v51  ;;  %1864 = vperm.xlu0 %3446, %v1822_v0  }
  0xc6   : > { %1869 = vperm.xlu1 %3447, %v1823_v2  }
  0xc7   : > { %3064 = vmatpush3.bf16.msra.mxu1 %v1230_v44 }
  0xc8   : > { %1620 = vmatprep.subr.bf16.mxu1 %v1214_v49 }
  0xc9   : > { %1874 = vperm.xlu0 %3446, %v1824_v4  }
  0xca   : > { %2947 = vmatmul.mubr.msk.bf16.gmra.mxu0 %vm1306_vm0, %v3450_v53  ;;  %3066 = vmatmul.mubr.msk.bf16.vlgmr.msra.gmra.mxu1 %vm1306_vm0, %v3450_v53 }
  0xcb   : > { %1383 = vmatprep.mubr.bf16.mxu0 %v4932_v24  ;;  %3069 = vmatprep.mubr.msk.bf16.mxu1 %vm1306_vm0, %v3451_v54 }
  0xcc   : > { %1621 = vmatpush1.bf16.msra.mxu1 %v1213_v55  ;;  %1879 = vperm.xlu1 %3447, %v1825_v5  }
  0xcd   : > { %1884 = vperm.xlu0 %3446, %v1826_v6  }
  0xd0   : > { %1889 = vperm.xlu1 %3447, %v1827_v7  }
  0xd1   : > { %1894 = vperm.xlu0 %3446, %v1828_v8  }
  0xd2   : > { %2948 = vmatmul.mubr.msk.bf16.gmra.mxu0 %vm1306_vm0, %v3451_v54  ;;  %3070 = vmatmul.mubr.msk.bf16.gmra.mxu1 %vm1306_vm0, %v3452_v59 }
  0xd3   : > { %1393 = vmatprep.mubr.bf16.mxu0 %v4932_v24  ;;  %3073 = vmatprep.mubr.msk.bf16.mxu1 %vm1306_vm0, %v3453_v60 }
  0xd4   : > { %1899 = vperm.xlu1 %3447, %v1829_v9  }
  0xd5   : > { %1904 = vperm.xlu0 %3446, %v1830_v10  }
  0xd8   : > { %1909 = vperm.xlu1 %3447, %v1831_v12  }
  0xda   : > { %2949 = vmatmul.mubr.msk.bf16.gmra.mxu0 %vm1306_vm0, %v3452_v59  ;;  %3074 = vmatmul.mubr.msk.bf16.gmra.mxu1 %vm1306_vm0, %v3454_v1 }
  0xdb   : > { %1403 = vmatprep.mubr.bf16.mxu0 %v4932_v24  ;;  %3077 = vmatprep.mubr.msk.bf16.mxu1 %vm1306_vm0, %v3455_v3 }
  0xe2   : > { %2950 = vmatmul.mubr.msk.bf16.gmra.mxu0 %vm1306_vm0, %v3453_v60  ;;  %3078 = vmatmul.mubr.msk.bf16.gmra.mxu1 %vm1306_vm0, %v4265_v43 }
  0xe3   : > { %1413 = vmatprep.mubr.bf16.mxu0 %v4932_v24  ;;  %1638 = vmatprep.mubr.bf16.mxu1 %v4932_v24 }
  0xea   : > { %2951 = vmatmul.mubr.msk.bf16.gmra.mxu0 %vm1306_vm0, %v3454_v1  ;;  %2970 = vmatmul.mubr.msk.bf16.vlgmr.msra.gmra.mxu1 %vm1581_vm1, %v3456_v11 }
  0xeb   : > { %1423 = vmatprep.mubr.bf16.mxu0 %v4932_v24  ;;  %1648 = vmatprep.mubr.bf16.mxu1 %v4932_v24 }
  0xf2   : > { %2952 = vmatmul.mubr.msk.bf16.gmra.mxu0 %vm1306_vm0, %v3455_v3  ;;  %2971 = vmatmul.mubr.msk.bf16.gmra.mxu1 %vm1581_vm1, %v3457_v13 }
  0xf3   : > { %1658 = vmatprep.mubr.bf16.mxu1 %v4932_v24  ;;  %3083 = vmatprep.mubr.msk.bf16.mxu0 %vm1581_vm1, %v3456_v11 }
  0xfa   : > { %2972 = vmatmul.mubr.msk.bf16.gmra.mxu1 %vm1581_vm1, %v3458_v14  ;;  %3084 = vmatmul.mubr.msk.bf16.vlgmr.msra.gmra.mxu0 %vm1581_vm1, %v3457_v13 }
  0xfb   : > { %1668 = vmatprep.mubr.bf16.mxu1 %v4932_v24  ;;  %3087 = vmatprep.mubr.msk.bf16.mxu0 %vm1581_vm1, %v3458_v14 }
 0x102   : > { %2973 = vmatmul.mubr.msk.bf16.gmra.mxu1 %vm1581_vm1, %v3459_v15  ;;  %3088 = vmatmul.mubr.msk.bf16.gmra.mxu0 %vm1581_vm1, %v3459_v15 }
 0x103   : > { %1678 = vmatprep.mubr.bf16.mxu1 %v4932_v24  ;;  %3091 = vmatprep.mubr.msk.bf16.mxu0 %vm1581_vm1, %v3460_v16 }
 0x10a   : > { %2974 = vmatmul.mubr.msk.bf16.gmra.mxu1 %vm1581_vm1, %v3460_v16  ;;  %3092 = vmatmul.mubr.msk.bf16.gmra.mxu0 %vm1581_vm1, %v3461_v17 }
 0x10b   : > { %1688 = vmatprep.mubr.bf16.mxu1 %v4932_v24  ;;  %3095 = vmatprep.mubr.msk.bf16.mxu0 %vm1581_vm1, %v3462_v18 }
 0x112   : > { %2975 = vmatmul.mubr.msk.bf16.gmra.mxu1 %vm1581_vm1, %v3461_v17  ;;  %3096 = vmatmul.mubr.msk.bf16.gmra.mxu0 %vm1581_vm1, %v3463_v19 }
 0x113   : > { %1698 = vmatprep.mubr.bf16.mxu1 %v4932_v24  ;;  %2118 = vmatprep.mubr.bf16.mxu0 %v4932_v24 }
 0x11a   : > { %2976 = vmatmul.mubr.msk.bf16.gmra.mxu1 %vm1581_vm1, %v3462_v18 }
 0x11b   : > { %1708 = vmatprep.mubr.bf16.mxu1 %v4932_v24 }
 0x122   : > { %2977 = vmatmul.mubr.msk.bf16.gmra.mxu1 %vm1581_vm1, %v3463_v19 }
 0x123   : > { %3103 = vmatprep.mubr.msk.bf16.mxu1 %vm1306_vm0, %v4409_v20 }
 0x131   : > { %v4481_v0 = vpop.permute.xlu1 %1834  ;;  %v1845_v10 = vpop.permute.xlu0 %1844 }
 0x138   : > { %v4490_v11 = vpop.permute.xlu1 %1839 }
 0x182   : > { %v1365_v21 = vpop.f32.mrf.mxu0  ;;  %v4413_v22 = vpop.f32.mrf.mxu1 }
 0x183   : > { %4949 = vst [vmem:[#allocation14_spill] sm:$0xff] %v4413_v22 }
 0x184   : > { %v1367_v23 = vpop.f32.mrf.mxu0  ;;  %v4415_v25 = vpop.f32.mrf.mxu1 }
 0x185   : > { %4950 = vst [vmem:[#allocation15_spill] sm:$0xff] %v4415_v25 }
 0x186   : > { %v1369_v26 = vpop.f32.mrf.mxu0  ;;  %v4417_v27 = vpop.f32.mrf.mxu1 }
 0x187   : > { %4951 = vst [vmem:[#allocation16_spill] sm:$0xff] %v4417_v27 }
 0x188   : > { %v1371_v28 = vpop.f32.mrf.mxu0  ;;  %v4419_v29 = vpop.f32.mrf.mxu1 }
 0x189   : > { %4952 = vst [vmem:[#allocation17_spill] sm:$0xff] %v4419_v29 }
 0x18a   : > { %v1375_v30 = vpop.f32.mrf.mxu0  ;;  %v4421_v31 = vpop.f32.mrf.mxu1 }
 0x18c   : > { %v1377_v32 = vpop.f32.mrf.mxu0  ;;  %v4423_v33 = vpop.f32.mrf.mxu1 }
 0x18e   : > { %v1379_v34 = vpop.f32.mrf.mxu0  ;;  %v4425_v35 = vpop.f32.mrf.mxu1 }
 0x190   : > { %v4427_v36 = vpop.f32.mrf.mxu0  ;;  %v4429_v37 = vpop.f32.mrf.mxu1 }
 0x192   : > { %v4431_v38 = vpop.f32.mrf.mxu0  ;;  %v4433_v39 = vpop.f32.mrf.mxu1 }
 0x194   : > { %v4435_v40 = vpop.f32.mrf.mxu0  ;;  %v4437_v41 = vpop.f32.mrf.mxu1 }
 0x196   : > { %v4439_v42 = vpop.f32.mrf.mxu0  ;;  %v4441_v43 = vpop.f32.mrf.mxu1 }
 0x198   : > { %v4443_v44 = vpop.f32.mrf.mxu0  ;;  %v4445_v45 = vpop.f32.mrf.mxu1 }
 0x19a   : > { %v4447_v46 = vpop.f32.mrf.mxu0  ;;  %v4449_v47 = vpop.f32.mrf.mxu1 }
 0x19c   : > { %v4451_v48 = vpop.f32.mrf.mxu0  ;;  %v4453_v49 = vpop.f32.mrf.mxu1 }
 0x19e   : > { %v4455_v50 = vpop.f32.mrf.mxu0  ;;  %v4457_v51 = vpop.f32.mrf.mxu1 }
 0x1a0   : > { %v4459_v52 = vpop.f32.mrf.mxu0  ;;  %v4461_v53 = vpop.f32.mrf.mxu1 }
 0x1a2   : > { %v4463_v54 = vpop.f32.mrf.mxu0  ;;  %v4465_v55 = vpop.f32.mrf.mxu1 }
 0x1a4   : > { %v4467_v56 = vpop.f32.mrf.mxu0  ;;  %v4469_v57 = vpop.f32.mrf.mxu1 }
 0x1a6   : > { %v4471_v58 = vpop.f32.mrf.mxu0  ;;  %v4473_v59 = vpop.f32.mrf.mxu1 }
 0x1a8   : > { %v4475_v60 = vpop.f32.mrf.mxu0  ;;  %v4477_v61 = vpop.f32.mrf.mxu1 }
 0x1aa   : > { %v4479_v62 = vpop.f32.mrf.mxu0  ;;  %v1640_v63 = vpop.f32.mrf.mxu1 }
 0x1ab   : > { %v1641_v13 = vadd.f32 %v1640_v63, %v1365_v21 }
 0x1ac   : > { %v4483_v1 = vpop.f32.mrf.mxu0  ;;  %v1642_v2 = vpop.f32.mrf.mxu1 }
 0x1ad   : > { %v1643_v3 = vadd.f32 %v1642_v2, %v1367_v23 }
 0x1ae   : > { %v4485_v4 = vpop.f32.mrf.mxu0  ;;  %v1644_v5 = vpop.f32.mrf.mxu1 }
 0x1af   : > { %v1913_v6 = vadd.f32 %v4481_v0, %v1643_v3  ;;  %v1645_v7 = vadd.f32 %v1644_v5, %v1369_v26  ;;  %v1912_v5 = vadd.f32 %v4481_v0, %v1641_v13 }
 0x1b0   : > { %v4488_v8 = vpop.f32.mrf.mxu0  ;;  %v1646_v9 = vpop.f32.mrf.mxu1 }
 0x1b1   : > { %v1647_v12 = vadd.f32 %v1646_v9, %v1371_v28  ;;  %v1961_v17 = vsub.f32 0.0, %v1913_v6  ;;  %v1915_v18 = vadd.f32 %v4490_v11, %v1645_v7  ;;  %v1850_v28 = vpop.permute.xlu0 %1849 }
 0x1b2   : > { %v4492_v14 = vpop.f32.mrf.mxu0  ;;  %v1650_v15 = vpop.f32.mrf.mxu1 }
 0x1b3   : > { %v1916_v16 = vadd.f32 %v4490_v11, %v1647_v12  ;;  %v1651_v19 = vadd.f32 %v1650_v15, %v1375_v30  ;;  %v1974_v12 = vmul.f32 1.442695, %v1961_v17  ;;  %v1963_v6 = vsub.f32 0.0, %v1915_v18 }
 0x1b4   : > { %v4496_v23 = vpop.f32.mrf.mxu0  ;;  %v1652_v26 = vpop.f32.mrf.mxu1 }
 0x1b5   : > { %4953 = vst [vmem:[#allocation18_spill] sm:$0xff] %v4496_v23  ;;  %v1964_v2 = vsub.f32 0.0, %v1916_v16  ;;  %v1653_v3 = vadd.f32 %v1652_v26, %v1377_v32  ;;  %v1918_v24 = vadd.f32 %v1845_v10, %v1651_v19  ;;  %v1960_v16 = vsub.f32 0.0, %v1912_v5 }
 0x1b6   : > { %v4499_v29 = vpop.f32.mrf.mxu0  ;;  %v1654_v21 = vpop.f32.mrf.mxu1 }
 0x1b7   : > { %4954 = vst [vmem:[#allocation19_spill] sm:$0xff] %v4499_v29  ;;  %v1980_v63 = vmul.f32 1.442695, %v1964_v2  ;;  %v1919_v9 = vadd.f32 %v1845_v10, %v1653_v3  ;;  %v1655_v27 = vadd.f32 %v1654_v21, %v1379_v34  ;;  %v1966_v25 = vsub.f32 0.0, %v1918_v24 }
 0x1b8   : > { %v4501_v7 = vpop.f32.mrf.mxu0  ;;  %v1656_v30 = vpop.f32.mrf.mxu1  ;;  %v1978_v24 = vmul.f32 1.442695, %v1963_v6 }
 0x1b9   : > { %4955 = vst [vmem:[#allocation20_spill] sm:$0xff] %v4501_v7  ;;  %v1967_v15 = vsub.f32 0.0, %v1919_v9  ;;  %v1921_v22 = vadd.f32 %v1850_v28, %v1655_v27  ;;  %v1657_v32 = vadd.f32 %v1656_v30, %v4427_v36  ;;  %3470 = vpow2.f32 %v1980_v63 }
 0x1ba   : > { %v1984_v13 = vmul.f32 1.442695, %v1966_v25  ;;  %v1660_v19 = vpop.f32.mrf.mxu1  ;;  %v3085_v26 = vpop.f32.mrf.mxu0  ;;  %3472 = vpow2.f32 %v1974_v12  ;;  %v1972_v25 = vmul.f32 1.442695, %v1960_v16 }
 0x1bb   : > { %v1986_v29 = vmul.f32 1.442695, %v1967_v15  ;;  %v1969_v23 = vsub.f32 0.0, %v1921_v22  ;;  %v1922_v2 = vadd.f32 %v1850_v28, %v1657_v32  ;;  %v4505_v34 = vadd.f32 %v1660_v19, %v4431_v38 }
 0x1bc   : > { %v1762_v17 = vadd.f32 %v3085_v26, %v4421_v31  ;;  %v1662_v18 = vpop.f32.mrf.mxu1  ;;  %v1753_v3 = vpop.f32.mrf.mxu0 }
 0x1bd   : > { %3474 = vpow2.f32 %v1986_v29  ;;  %v1990_v27 = vmul.f32 1.442695, %v1969_v23  ;;  %v1970_v36 = vsub.f32 0.0, %v1922_v2  ;;  %v4509_v5 = vadd.f32 %v1662_v18, %v4435_v40 }
 0x1be   : > { %3476 = vpow2.f32 %v1984_v13  ;;  %v1920_v21 = vadd.f32 %v1845_v10, %v1762_v17  ;;  %v1754_v22 = vadd.f32 %v1753_v3, %v4423_v33  ;;  %v1664_v63 = vpop.f32.mrf.mxu1  ;;  %v3086_v38 = vpop.f32.mrf.mxu0 }
 0x1bf   : > { %3478 = vpow2.f32 %v1990_v27  ;;  %v1992_v9 = vmul.f32 1.442695, %v1970_v36  ;;  %v4513_v12 = vadd.f32 %v1664_v63, %v4439_v42  ;;  %v1765_v31 = vadd.f32 %v3086_v38, %v4425_v35 }
 0x1c0   : > { %3480 = vpow2.f32 %v1978_v24  ;;  %v1968_v29 = vsub.f32 0.0, %v1920_v21  ;;  %v1914_v23 = vadd.f32 %v4481_v0, %v1754_v22  ;;  %v1666_v40 = vpop.f32.mrf.mxu1  ;;  %v1756_v6 = vpop.f32.mrf.mxu0 }
 0x1c1   : > { %3482 = vpow2.f32 %v1992_v9  ;;  %v1923_v30 = vadd.f32 %v1850_v28, %v1765_v31  ;;  %v4518_v10 = vadd.f32 %v1666_v40, %v4443_v44  ;;  %v1757_v32 = vadd.f32 %v1756_v6, %v4429_v37 }
 0x1c2   : > { %3484 = vpow2.f32 %v1972_v25  ;;  %v1988_v33 = vmul.f32 1.442695, %v1968_v29  ;;  %v1962_v15 = vsub.f32 0.0, %v1914_v23  ;;  %v1670_v42 = vpop.f32.mrf.mxu1 }
 0x1c3   : > { %v1971_v16 = vsub.f32 0.0, %v1923_v30  ;;  %v4522_v35 = vadd.f32 %v1670_v42, %v4447_v46  ;;  %v1917_v0 = vadd.f32 %v4490_v11, %v1757_v32 }
 0x1c4   : > { %3486 = vpow2.f32 %v1988_v33  ;;  %v1976_v13 = vmul.f32 1.442695, %v1962_v15  ;;  %v1672_v19 = vpop.f32.mrf.mxu1 }
 0x1c5   : > { %v1994_v26 = vmul.f32 1.442695, %v1971_v16  ;;  %v4526_v28 = vadd.f32 %v1672_v19, %v4451_v48  ;;  %v1965_v44 = vsub.f32 0.0, %v1917_v0 }
 0x1c6   : > { %3488 = vpow2.f32 %v1976_v13  ;;  %v1674_v2 = vpop.f32.mrf.mxu1  ;;  %v3471_v24 = vpop.eup %3470 }
 0x1c7   : > { %v4529_v37 = vadd.f32 %v1674_v2, %v4455_v50  ;;  %3490 = vpow2.f32 %v1994_v26  ;;  %v1982_v17 = vmul.f32 1.442695, %v1965_v44  ;;  %v3473_v18 = vpop.eup %3472  ;;  %v2000_v27 = vadd.f32 1.0, %v3471_v24 }
 0x1c8   : > { %v1676_v46 = vpop.f32.mrf.mxu1  ;;  %v1997_v9 = vadd.f32 1.0, %v3473_v18 }
 0x1c9   : > { %v4532_v3 = vadd.f32 %v1676_v46, %v4459_v52  ;;  %3492 = vpow2.f32 %v1982_v17 }
 0x1ca   : > { %v3475_v11 = vpop.eup %3474  ;;  %3494 = vrcp.f32 %v2000_v27 }
 0x1cb   : > { %v3477_v36 = vpop.eup %3476  ;;  %v2003_v48 = vadd.f32 1.0, %v3475_v11 }
 0x1cc   : > { %v3479_v25 = vpop.eup %3478  ;;  %v2002_v38 = vadd.f32 1.0, %v3477_v36 }
 0x1cd   : > { %v3481_v21 = vpop.eup %3480  ;;  %v2005_v22 = vadd.f32 1.0, %v3479_v25  ;;  %3496 = vrcp.f32 %v2003_v48 }
 0x1ce   : > { %v3483_v63 = vpop.eup %3482  ;;  %v1999_v29 = vadd.f32 1.0, %v3481_v21 }
 0x1cf   : > { %v3485_v50 = vpop.eup %3484  ;;  %v2006_v31 = vadd.f32 1.0, %v3483_v63  ;;  %3498 = vrcp.f32 %v2005_v22  ;;  %v4956_v63 = vmov 0  }
 0x1d0   : > { %v1996_v52 = vadd.f32 1.0, %v3485_v50  ;;  %v3466_v50 = vld [vmem:[%s4924_s4 + $0x10] sm:$0xff]  }
 0x1d1   : > { %v3487_v23 = vpop.eup %3486  ;;  %3500 = vrcp.f32 %v2006_v31  ;;  %v3469_v31 = vld [vmem:[%s4924_s4 + $0x28] sm:$0xff]  }
 0x1d2   : > { %3502 = vrcp.f32 %v2002_v38  ;;  %v2004_v6 = vadd.f32 1.0, %v3487_v23  ;;  %v3465_v38 = vld [vmem:[%s4924_s4 + $0x8] sm:$0xff]  }
 0x1d3   : > { %v3489_v40 = vpop.eup %3488  ;;  %3504 = vrcp.f32 %v1997_v9  ;;  %v3468_v9 = vld [vmem:[%s4924_s4 + $0x20] sm:$0xff]  }
 0x1d4   : > { %3506 = vrcp.f32 %v1999_v29  ;;  %v3491_v30 = vpop.eup %3490  ;;  %v1998_v33 = vadd.f32 1.0, %v3489_v40  ;;  %v1680_v29 = vpop.f32.mrf.mxu1 }
 0x1d5   : > { %3508 = vrcp.f32 %v1996_v52  ;;  %v2007_v15 = vadd.f32 1.0, %v3491_v30  ;;  %v3089_v40 = vpop.f32.mrf.mxu0 }
 0x1d6   : > { %v3493_v32 = vpop.eup %3492  ;;  %3510 = vrcp.f32 %v2004_v6  ;;  %v1682_v23 = vpop.f32.mrf.mxu1 }
 0x1d7   : > { %3512 = vrcp.f32 %v2007_v15  ;;  %v2001_v42 = vadd.f32 1.0, %v3493_v32  ;;  %v3495_v16 = vpop.eup %3494  ;;  %v1769_v30 = vpop.f32.mrf.mxu0 }
 0x1d8   : > { %3514 = vrcp.f32 %v1998_v33  ;;  %v1684_v52 = vpop.f32.mrf.mxu1 }
 0x1d9   : > { %3516 = vrcp.f32 %v2001_v42  ;;  %v3090_v15 = vpop.f32.mrf.mxu0 }
 0x1da   : > { %v3497_v13 = vpop.eup %3496  ;;  %v4566_v6 = vpop.f32.mrf.mxu1 }
 0x1db   : > { %v1772_v42 = vpop.f32.mrf.mxu0 }
 0x1dc   : > { %v3499_v0 = vpop.eup %3498  ;;  %v4568_v33 = vpop.f32.mrf.mxu1 }
 0x1de   : > { %v3501_v19 = vpop.eup %3500  ;;  %v4570_v32 = vpop.f32.mrf.mxu1 }
 0x1df   : > { %v3503_v26 = vpop.eup %3502  ;;  %v2036_v44 = vpack.c.bf16 %v3501_v19, %v3497_v13  ;;  %v3093_v13 = vpop.f32.mrf.mxu0 }
 0x1e0   : > { %v3505_v2 = vpop.eup %3504  ;;  %v2035_v24 = vpack.c.bf16 %v3499_v0, %v3503_v26 }
 0x1e1   : > { %v3507_v17 = vpop.eup %3506  ;;  %2098 = vmatprep.subr.bf16.mxu0 %v2036_v44  ;;  %v2033_v46 = vpack.c.bf16 %v3495_v16, %v3505_v2  ;;  %v4572_v16 = vpop.f32.mrf.mxu1 }
 0x1e2   : > { %2099 = vmatpush1.bf16.msra.mxu0 %v2035_v24  ;;  %v3509_v18 = vpop.eup %3508  ;;  %v1785_v19 = vpop.f32.mrf.mxu0 }
 0x1e3   : > { %2100 = vmatprep.subr.bf16.mxu0 %v2033_v46  ;;  %v3511_v11 = vpop.eup %3510  ;;  %v2032_v27 = vpack.c.bf16 %v3507_v17, %v3509_v18  ;;  %v4574_v0 = vpop.f32.mrf.mxu1 }
 0x1e4   : > { %v3513_v36 = vpop.eup %3512  ;;  %v3094_v44 = vpop.f32.mrf.mxu0 }
 0x1e5   : > { %v3515_v48 = vpop.eup %3514  ;;  %v2037_v25 = vpack.c.bf16 %v3513_v36, %v3511_v11  ;;  %v4576_v26 = vpop.f32.mrf.mxu1 }
 0x1e6   : > { %2101 = vmatpush1.bf16.msra.mxu0 %v2032_v27  ;;  %v3517_v21 = vpop.eup %3516  ;;  %4957 = vst [vmem:[#allocation21_spill] sm:$0xff] %v4576_v26  ;;  %v1788_v24 = vpop.f32.mrf.mxu0 }
 0x1e7   : > { %3099 = vmatprep.subr.bf16.mxu1 %v2037_v25  ;;  %v2034_v22 = vpack.c.bf16 %v3517_v21, %v3515_v48  ;;  %v4578_v2 = vpop.f32.mrf.mxu1  ;;  %v1855_v17 = vpop.permute.xlu0 %1854 }
 0x1e8   : > { %3100 = vmatpush3.bf16.msra.mxu1 %v2037_v25  ;;  %4958 = vst [vmem:[#allocation22_spill] sm:$0xff] %v4578_v2  ;;  %v4582_v18 = vpop.f32.mrf.mxu0  ;;  %v1860_v11 = vpop.permute.xlu1 %1859  ;;  %v1924_v7 = vadd.f32 %v1855_v17, %v4505_v34  ;;  %v1683_v34 = vadd.f32 %v1682_v23, %v4467_v56 }
 0x1e9   : > { %2992 = vmatmul.mubr.msk.bf16.vlgmr.msra.gmra.mxu0 %vm1306_vm0, %v4409_v20  ;;  %3101 = vmatprep.subr.bf16.mxu1 %v2034_v22  ;;  %v3467_v20 = vld [vmem:[%s4924_s4 + $0x18] sm:$0xff]   ;;  %v4580_v46 = vpop.f32.mrf.mxu1 }
 0x1ea   : > { %2128 = vmatprep.mubr.bf16.mxu0 %v4956_v63  ;;  %4959 = vst [vmem:[#allocation23_spill] sm:$0xff] %v4580_v46  ;;  %v4586_v36 = vpop.f32.mrf.mxu0  ;;  %v1794_v46 = vadd.f32 %v3093_v13, %v4449_v47 }
 0x1eb   : > { %v4584_v27 = vpop.f32.mrf.mxu1  ;;  %v1865_v48 = vpop.permute.xlu0 %1864 }
 0x1ec   : > { %3102 = vmatpush3.bf16.msra.mxu1 %v2034_v22  ;;  %4960 = vst [vmem:[#allocation24_spill] sm:$0xff] %v4584_v27  ;;  %v4590_v21 = vpop.f32.mrf.mxu0  ;;  %v1870_v22 = vpop.permute.xlu1 %1869  ;;  %v1773_v27 = vadd.f32 %v1772_v42, %v4445_v45  ;;  %v1930_v45 = vadd.f32 %v1865_v48, %v4522_v35  ;;  %v1931_v13 = vadd.f32 %v1865_v48, %v4526_v28 }
 0x1ed   : > { %v4588_v25 = vpop.f32.mrf.mxu1  ;;  %v1797_v35 = vadd.f32 %v3094_v44, %v4457_v51  ;;  %v1934_v56 = vadd.f32 %v1870_v22, %v4532_v3 }
 0x1ee   : > { %4961 = vst [vmem:[#allocation25_spill] sm:$0xff] %v4588_v25  ;;  %v1925_v25 = vadd.f32 %v1855_v17, %v4509_v5  ;;  %v1786_v5 = vadd.f32 %v1785_v19, %v4453_v49 }
 0x1ef   : > { %3104 = vmatmul.mubr.msk.bf16.vlgmr.msra.gmra.mxu1 %vm1306_vm0, %v3465_v38 }
 0x1f0   : > { %3107 = vmatprep.mubr.msk.bf16.mxu1 %vm1306_vm0, %v3466_v50 }
 0x1f1   : > { %2993 = vmatmul.mubr.msk.bf16.gmra.mxu0 %vm1306_vm0, %v3465_v38  ;;  %v1875_v38 = vpop.permute.xlu0 %1874 }
 0x1f2   : > { %2138 = vmatprep.mubr.bf16.mxu0 %v4956_v63 }
 0x1f5   : > { %v4612_v26 = vpop.permute.xlu0 %1884 }
 0x1f6   : > { %v1944_v49 = vadd.f32 %v4612_v26, %v1794_v46 }
 0x1f7   : > { %3108 = vmatmul.mubr.msk.bf16.gmra.mxu1 %vm1306_vm0, %v3467_v20 }
 0x1f8   : > { %3111 = vmatprep.mubr.msk.bf16.mxu1 %vm1306_vm0, %v3468_v9 }
 0x1f9   : > { %2994 = vmatmul.mubr.msk.bf16.gmra.mxu0 %vm1306_vm0, %v3466_v50  ;;  %v1770_v50 = vadd.f32 %v1769_v30, %v4437_v41  ;;  %v1880_v30 = vpop.permute.xlu1 %1879 }
 0x1fa   : > { %2148 = vmatprep.mubr.bf16.mxu0 %v4956_v63 }
 0x1fb   : > { %v1926_v42 = vadd.f32 %v1855_v17, %v1770_v50 }
 0x1fd   : > { %v4626_v51 = vpop.permute.xlu1 %1889 }
 0x1ff   : > { %3112 = vmatmul.mubr.msk.bf16.gmra.mxu1 %vm1306_vm0, %v3469_v31 }
 0x201   : > { %2995 = vmatmul.mubr.msk.bf16.gmra.mxu0 %vm1306_vm0, %v3467_v20  ;;  %v4594_v20 = vpop.f32.mrf.mxu1 }
 0x202   : > { %2158 = vmatprep.mubr.bf16.mxu0 %v4956_v63  ;;  %4962 = vst [vmem:[#allocation26_spill] sm:$0xff] %v4594_v20  ;;  %v1681_v20 = vadd.f32 %v1680_v29, %v4463_v54  ;;  %v1933_v54 = vadd.f32 %v1870_v22, %v4529_v37  ;;  %v1929_v29 = vadd.f32 %v1860_v11, %v1773_v27 }
 0x203   : > { %v1789_v37 = vadd.f32 %v1788_v24, %v4461_v53 }
 0x209   : > { %2996 = vmatmul.mubr.msk.bf16.gmra.mxu0 %vm1306_vm0, %v3468_v9  ;;  %v1781_v9 = vadd.f32 %v3090_v15, %v4441_v43  ;;  %v4606_v43 = vpop.f32.mrf.mxu1 }
 0x20a   : > { %2168 = vmatprep.mubr.bf16.mxu0 %v4956_v63  ;;  %v1778_v63 = vadd.f32 %v3089_v40, %v4433_v39  ;;  %v1927_v39 = vadd.f32 %v1860_v11, %v4513_v12  ;;  %v1928_v40 = vadd.f32 %v1860_v11, %v4518_v10 }
 0x20b   : > { %v1935_v12 = vadd.f32 %v1870_v22, %v1781_v9  ;;  %v4619_v23 = vpop.f32.mrf.mxu1  ;;  %v4630_v22 = vadd.f32 %v4568_v33, %v4479_v62  ;;  %v4641_v33 = vadd.f32 %v1880_v30, %v1789_v37 }
 0x20c   : > { %v1932_v41 = vadd.f32 %v1865_v48, %v1778_v63  ;;  %v1936_v48 = vadd.f32 %v1875_v38, %v1681_v20 }
 0x211   : > { %2997 = vmatmul.mubr.msk.bf16.gmra.mxu0 %vm1306_vm0, %v3469_v31  ;;  %v4597_v31 = vpop.f32.mrf.mxu0 }
 0x2a9   : > { %v2120_v2 = vpop.f32.mrf.mxu0 }
 0x2aa   : > { %v2260_v15 = vadd.f32 %v2120_v2, %v1924_v7  ;;  %v1685_v7 = vadd.f32 %v1684_v52, %v4471_v58  ;;  %v1938_v58 = vadd.f32 %v1875_v38, %v1786_v5  ;;  %v4624_v52 = vadd.f32 %v1875_v38, %v1683_v34 }
 0x2ab   : > { %v2122_v47 = vpop.f32.mrf.mxu0 }
 0x2ac   : > { %v2296_v10 = vsub.f32 0.0, %v2260_v15  ;;  %v2261_v63 = vadd.f32 %v2122_v47, %v1925_v25  ;;  %v1687_v25 = vadd.f32 %v4566_v6, %v4475_v60  ;;  %v4633_v60 = vadd.f32 %v4626_v51, %v1797_v35 }
 0x2ad   : > { %v2124_v2 = vpop.f32.mrf.mxu0  ;;  %v4635_v53 = vadd.f32 %v1880_v30, %v1685_v7 }
 0x2ae   : > { %v2332_v28 = vmul.f32 1.442695, %v2296_v10  ;;  %v2297_v19 = vsub.f32 0.0, %v2261_v63  ;;  %v2263_v17 = vadd.f32 %v2124_v2, %v1927_v39  ;;  %v4639_v39 = vadd.f32 %v4582_v18, %v4465_v55 }
 0x2af   : > { %v2126_v11 = vpop.f32.mrf.mxu0  ;;  %v3105_v27 = vpop.f32.mrf.mxu1 }
 0x2b0   : > { %3518 = vpow2.f32 %v2332_v28  ;;  %v2334_v3 = vmul.f32 1.442695, %v2297_v19  ;;  %v2299_v44 = vsub.f32 0.0, %v2263_v17  ;;  %v2264_v46 = vadd.f32 %v2126_v11, %v1928_v40 }
 0x2b1   : > { %v2268_v50 = vadd.f32 %v3105_v27, %v1932_v41  ;;  %v2130_v20 = vpop.f32.mrf.mxu0  ;;  %v2213_v9 = vpop.f32.mrf.mxu1 }
 0x2b2   : > { %3520 = vpow2.f32 %v2334_v3  ;;  %v2338_v6 = vmul.f32 1.442695, %v2299_v44  ;;  %v2300_v24 = vsub.f32 0.0, %v2264_v46  ;;  %v2266_v38 = vadd.f32 %v2130_v20, %v1930_v45  ;;  %v4645_v46 = vpop.permute.xlu0 %1894 }
 0x2b3   : > { %v2304_v40 = vsub.f32 0.0, %v2268_v50  ;;  %v2262_v15 = vadd.f32 %v2213_v9, %v1926_v42  ;;  %v2132_v62 = vpop.f32.mrf.mxu0  ;;  %v3106_v47 = vpop.f32.mrf.mxu1  ;;  %v4643_v45 = vadd.f32 %v1880_v30, %v1687_v25 }
 0x2b4   : > { %3522 = vpow2.f32 %v2338_v6  ;;  %v2340_v41 = vmul.f32 1.442695, %v2300_v24  ;;  %v2302_v34 = vsub.f32 0.0, %v2266_v38  ;;  %v2267_v5 = vadd.f32 %v2132_v62, %v1931_v13 }
 0x2b5   : > { %v2348_v10 = vmul.f32 1.442695, %v2304_v40  ;;  %v2298_v63 = vsub.f32 0.0, %v2262_v15  ;;  %v2271_v7 = vadd.f32 %v3106_v47, %v1935_v12  ;;  %v2134_v35 = vpop.f32.mrf.mxu0  ;;  %v2216_v28 = vpop.f32.mrf.mxu1 }
 0x2b6   : > { %3524 = vpow2.f32 %v2340_v41  ;;  %v2344_v2 = vmul.f32 1.442695, %v2302_v34  ;;  %v2303_v55 = vsub.f32 0.0, %v2267_v5  ;;  %v2269_v18 = vadd.f32 %v2134_v35, %v1933_v54  ;;  %v4647_v40 = vpop.permute.xlu1 %1899 }
 0x2b7   : > { %3526 = vpow2.f32 %v2348_v10  ;;  %v2336_v42 = vmul.f32 1.442695, %v2298_v63  ;;  %v2307_v19 = vsub.f32 0.0, %v2271_v7  ;;  %v2265_v17 = vadd.f32 %v2216_v28, %v1929_v29  ;;  %v2136_v37 = vpop.f32.mrf.mxu0  ;;  %v3109_v44 = vpop.f32.mrf.mxu1 }
 0x2b8   : > { %3528 = vpow2.f32 %v2344_v2  ;;  %v2346_v11 = vmul.f32 1.442695, %v2303_v55  ;;  %v2305_v13 = vsub.f32 0.0, %v2269_v18  ;;  %v2270_v3 = vadd.f32 %v2136_v37, %v1934_v56  ;;  %v4652_v2 = vpop.permute.xlu0 %1904 }
 0x2b9   : > { %3530 = vpow2.f32 %v2336_v42  ;;  %v2354_v30 = vmul.f32 1.442695, %v2307_v19  ;;  %v2301_v12 = vsub.f32 0.0, %v2265_v17  ;;  %v2280_v25 = vadd.f32 %v3109_v44, %v1944_v49  ;;  %v2140_v27 = vpop.f32.mrf.mxu0  ;;  %v2229_v6 = vpop.f32.mrf.mxu1  ;;  %v4963_v44 = vld [vmem:[#allocation21_spill] sm:$0xff] }
 0x2ba   : > { %3532 = vpow2.f32 %v2346_v11  ;;  %v2350_v54 = vmul.f32 1.442695, %v2305_v13  ;;  %v2306_v50 = vsub.f32 0.0, %v2270_v3  ;;  %v2272_v20 = vadd.f32 %v2140_v27, %v1936_v48  ;;  %v4965_v27 = vld [vmem:[#allocation22_spill] sm:$0xff] }
 0x2bb   : > { %3534 = vpow2.f32 %v2354_v30  ;;  %v2342_v29 = vmul.f32 1.442695, %v2301_v12  ;;  %v2316_v24 = vsub.f32 0.0, %v2280_v25  ;;  %v2274_v38 = vadd.f32 %v2229_v6, %v1938_v58  ;;  %v2142_v9 = vpop.f32.mrf.mxu0  ;;  %v3110_v41 = vpop.f32.mrf.mxu1  ;;  %v4964_v25 = vld [vmem:[#allocation18_spill] sm:$0xff] }
 0x2bc   : > { %3536 = vpow2.f32 %v2350_v54  ;;  %v2352_v56 = vmul.f32 1.442695, %v2306_v50  ;;  %v2308_v15 = vsub.f32 0.0, %v2272_v20  ;;  %v2273_v62 = vadd.f32 %v2142_v9, %v4624_v52 }
 0x2bd   : > { %v3519_v49 = vpop.eup %3518  ;;  %v1802_v34 = vadd.f32 %v4586_v36, %v4469_v57  ;;  %3538 = vpow2.f32 %v2342_v29  ;;  %v2372_v48 = vmul.f32 1.442695, %v2316_v24  ;;  %v2310_v5 = vsub.f32 0.0, %v2274_v38  ;;  %v2144_v47 = vpop.f32.mrf.mxu0 }
 0x2be   : > { %v2404_v10 = vadd.f32 1.0, %v3519_v49  ;;  %3540 = vpow2.f32 %v2352_v56  ;;  %v2356_v58 = vmul.f32 1.442695, %v2308_v15  ;;  %v2309_v63 = vsub.f32 0.0, %v2273_v62  ;;  %v2232_v7 = vpop.f32.mrf.mxu1 }
 0x2bf   : > { %v3521_v35 = vpop.eup %3520  ;;  %v1693_v52 = vadd.f32 %v4570_v32, %v4483_v1  ;;  %v1813_v55 = vadd.f32 %v4590_v21, %v4473_v59  ;;  %3542 = vpow2.f32 %v2372_v48  ;;  %v2360_v57 = vmul.f32 1.442695, %v2310_v5  ;;  %v2146_v36 = vpop.f32.mrf.mxu0 }
 0x2c0   : > { %v1695_v18 = vadd.f32 %v4572_v16, %v4485_v4  ;;  %3544 = vrcp.f32 %v2404_v10  ;;  %v2405_v28 = vadd.f32 1.0, %v3521_v35  ;;  %v1956_v42 = vadd.f32 %v4652_v2, %v4639_v39  ;;  %v4668_v21 = vpop.permute.xlu1 %1909  ;;  %v3113_v37 = vpop.f32.mrf.mxu1 }
 0x2c1   : > { %v3523_v19 = vpop.eup %3522  ;;  %v1805_v17 = vadd.f32 %v4597_v31, %v4477_v61  ;;  %3546 = vpow2.f32 %v2356_v58  ;;  %v2358_v1 = vmul.f32 1.442695, %v2309_v63  ;;  %v4666_v59 = vadd.f32 %v4612_v26, %v4630_v22  ;;  %v2150_v32 = vpop.f32.mrf.mxu0 }
 0x2c2   : > { %v1697_v4 = vadd.f32 %v4574_v0, %v4488_v8  ;;  %3548 = vrcp.f32 %v2405_v28  ;;  %v2407_v16 = vadd.f32 1.0, %v3523_v19  ;;  %v1950_v39 = vadd.f32 %v4645_v46, %v1802_v34  ;;  %v2245_v29 = vpop.f32.mrf.mxu1 }
 0x2c3   : > { %v3525_v11 = vpop.eup %3524  ;;  %3550 = vpow2.f32 %v2360_v57  ;;  %v2283_v61 = vadd.f32 %v3110_v41, %v4633_v60  ;;  %v1943_v31 = vadd.f32 %v4612_v26, %v1693_v52  ;;  %v2152_v13 = vpop.f32.mrf.mxu0  ;;  %v4676_v22 = vadd.f32 %v4668_v21, %v1813_v55 }
 0x2c4   : > { %v3527_v3 = vpop.eup %3526  ;;  %v1701_v30 = vadd.f32 %v4963_v44, %v4492_v14  ;;  %3552 = vrcp.f32 %v2407_v16  ;;  %v2408_v8 = vadd.f32 1.0, %v3525_v11  ;;  %v4681_v0 = vadd.f32 %v4626_v51, %v1695_v18  ;;  %v3114_v52 = vpop.f32.mrf.mxu1  ;;  %v4969_v16 = vld [vmem:[#allocation24_spill] sm:$0xff] }
 0x2c5   : > { %v3529_v12 = vpop.eup %3528  ;;  %v1703_v54 = vadd.f32 %v4965_v27, %v4964_v25  ;;  %v2412_v60 = vadd.f32 1.0, %v3527_v3  ;;  %3554 = vpow2.f32 %v2358_v1  ;;  %v2154_v26 = vpop.f32.mrf.mxu0  ;;  %v4686_v50 = vadd.f32 %v4647_v40, %v1805_v17 }
 0x2c6   : > { %v3531_v20 = vpop.eup %3530  ;;  %3556 = vrcp.f32 %v2408_v8  ;;  %v2410_v6 = vadd.f32 1.0, %v3529_v12  ;;  %v2275_v14 = vadd.f32 %v2144_v47, %v4635_v53  ;;  %v4690_v24 = vadd.f32 %v4626_v51, %v1697_v4  ;;  %v4966_v53 = vld [vmem:[#allocation19_spill] sm:$0xff]  ;;  %v4968_v4 = vld [vmem:[#allocation20_spill] sm:$0xff]  ;;  %v2248_v8 = vpop.f32.mrf.mxu1 }
 0x2c7   : > { %v3533_v38 = vpop.eup %3532  ;;  %3558 = vrcp.f32 %v2412_v60  ;;  %v2406_v9 = vadd.f32 1.0, %v3531_v20  ;;  %v2319_v56 = vsub.f32 0.0, %v2283_v61  ;;  %v2277_v15 = vadd.f32 %v2232_v7, %v4641_v33  ;;  %v2156_v62 = vpop.f32.mrf.mxu0  ;;  %v4967_v47 = vld [vmem:[#allocation23_spill] sm:$0xff] }
 0x2c8   : > { %v3535_v41 = vpop.eup %3534  ;;  %3560 = vrcp.f32 %v2410_v6  ;;  %v2411_v49 = vadd.f32 1.0, %v3533_v38  ;;  %v2276_v34 = vadd.f32 %v2146_v36, %v4643_v45  ;;  %v1948_v48 = vadd.f32 %v4645_v46, %v1701_v30 }
 0x2c9   : > { %v3537_v5 = vpop.eup %3536  ;;  %v4697_v10 = vadd.f32 %v4967_v47, %v4966_v53  ;;  %3562 = vrcp.f32 %v2406_v9  ;;  %v2415_v51 = vadd.f32 1.0, %v3535_v41  ;;  %v4700_v58 = vadd.f32 %v4645_v46, %v1703_v54  ;;  %v2160_v55 = vpop.f32.mrf.mxu0 }
 0x2ca   : > { %v3539_v63 = vpop.eup %3538  ;;  %3564 = vrcp.f32 %v2411_v49  ;;  %v2413_v33 = vadd.f32 1.0, %v3537_v5  ;;  %v2311_v7 = vsub.f32 0.0, %v2275_v14  ;;  %v2292_v35 = vadd.f32 %v3113_v37, %v1956_v42 }
 0x2cb   : > { %v3541_v45 = vpop.eup %3540  ;;  %3566 = vrcp.f32 %v2415_v51  ;;  %v2409_v57 = vadd.f32 1.0, %v3539_v63  ;;  %v2378_v36 = vmul.f32 1.442695, %v2319_v56  ;;  %v2313_v18 = vsub.f32 0.0, %v2277_v15  ;;  %v2162_v12 = vpop.f32.mrf.mxu0 }
 0x2cc   : > { %v3543_v28 = vpop.eup %3542  ;;  %3568 = vrcp.f32 %v2413_v33  ;;  %v2414_v19 = vadd.f32 1.0, %v3541_v45  ;;  %v2312_v17 = vsub.f32 0.0, %v2276_v34  ;;  %v2278_v1 = vadd.f32 %v2150_v32, %v4666_v59 }
 0x2cd   : > { %v4703_v46 = vpop.eup %3544  ;;  %v1707_v11 = vadd.f32 %v4969_v16, %v4968_v4  ;;  %3570 = vrcp.f32 %v2409_v57  ;;  %v2424_v42 = vadd.f32 1.0, %v3543_v28  ;;  %v2286_v37 = vadd.f32 %v2245_v29, %v1950_v39 }
 0x2ce   : > { %v3547_v61 = vpop.eup %3546  ;;  %3572 = vrcp.f32 %v2414_v19  ;;  %v2362_v3 = vmul.f32 1.442695, %v2311_v7  ;;  %v2328_v44 = vsub.f32 0.0, %v2292_v35  ;;  %v2279_v30 = vadd.f32 %v2152_v13, %v1943_v31 }
 0x2cf   : > { %v4707_v25 = vpop.eup %3548  ;;  %3574 = vrcp.f32 %v2424_v42  ;;  %v2416_v27 = vadd.f32 1.0, %v3547_v61  ;;  %v2366_v59 = vmul.f32 1.442695, %v2313_v18  ;;  %v2295_v32 = vadd.f32 %v3114_v52, %v4676_v22  ;;  %v2164_v22 = vpop.f32.mrf.mxu0 }
 0x2d0   : > { %v3551_v54 = vpop.eup %3550  ;;  %3576 = vpow2.f32 %v2378_v36  ;;  %v2364_v60 = vmul.f32 1.442695, %v2312_v17  ;;  %v2314_v20 = vsub.f32 0.0, %v2278_v1  ;;  %v2281_v39 = vadd.f32 %v2154_v26, %v4681_v0 }
 0x2d1   : > { %v4711_v6 = vpop.eup %3552  ;;  %3578 = vrcp.f32 %v2416_v27  ;;  %v2418_v14 = vadd.f32 1.0, %v3551_v54  ;;  %v2322_v31 = vsub.f32 0.0, %v2286_v37  ;;  %v2289_v13 = vadd.f32 %v2248_v8, %v4686_v50  ;;  %v2166_v7 = vpop.f32.mrf.mxu0  ;;  %v4971_v8 = vld [vmem:[#allocation25_spill] sm:$0xff] }
 0x2d2   : > { %v3555_v29 = vpop.eup %3554  ;;  %3580 = vpow2.f32 %v2362_v3  ;;  %v2396_v38 = vmul.f32 1.442695, %v2328_v44  ;;  %v2315_v9 = vsub.f32 0.0, %v2279_v30  ;;  %v2282_v56 = vadd.f32 %v2156_v62, %v4690_v24  ;;  %v4970_v30 = vld [vmem:[#allocation14_spill] sm:$0xff] }
 0x2d3   : > { %v4715_v15 = vpop.eup %3556  ;;  %3582 = vrcp.f32 %v2418_v14  ;;  %v2417_v41 = vadd.f32 1.0, %v3555_v29  ;;  %v2331_v49 = vsub.f32 0.0, %v2295_v32  ;;  %v2284_v0 = vadd.f32 %v2160_v55, %v1948_v48  ;;  %v2170_v16 = vpop.f32.mrf.mxu0  ;;  %v4973_v14 = vld [vmem:[#allocation26_spill] sm:$0xff] }
 0x2d4   : > { %v3559_v26 = vpop.eup %3558  ;;  %3584 = vpow2.f32 %v2366_v59  ;;  %v2368_v34 = vmul.f32 1.442695, %v2314_v20  ;;  %v2317_v5 = vsub.f32 0.0, %v2281_v39  ;;  %v1951_v50 = vadd.f32 %v4647_v40, %v4697_v10  ;;  %v4972_v39 = vld [vmem:[#allocation15_spill] sm:$0xff] }
 0x2d5   : > { %v4719_v53 = vpop.eup %3560  ;;  %3586 = vrcp.f32 %v2417_v41  ;;  %v2384_v47 = vmul.f32 1.442695, %v2322_v31  ;;  %v2325_v51 = vsub.f32 0.0, %v2289_v13  ;;  %v2285_v24 = vadd.f32 %v2162_v12, %v4700_v58 }
 0x2d6   : > { %v3563_v62 = vpop.eup %3562  ;;  %3588 = vpow2.f32 %v2364_v60  ;;  %v2370_v63 = vmul.f32 1.442695, %v2315_v9  ;;  %v2318_v33 = vsub.f32 0.0, %v2282_v56  ;;  %v1952_v48 = vadd.f32 %v4647_v40, %v1707_v11  ;;  %v2172_v60 = vpop.f32.mrf.mxu0 }
 0x2d7   : > { %v4723_v35 = vpop.eup %3564  ;;  %3590 = vpow2.f32 %v2396_v38  ;;  %v2402_v52 = vmul.f32 1.442695, %v2331_v49  ;;  %v2320_v55 = vsub.f32 0.0, %v2284_v0  ;;  %v2287_v10 = vadd.f32 %v2164_v22, %v1951_v50  ;;  %v4974_v22 = vld [vmem:[#allocation16_spill] sm:$0xff] }
 0x2d8   : > { %v4725_v45 = vpop.eup %3566  ;;  %3592 = vpow2.f32 %v2368_v34  ;;  %v2374_v57 = vmul.f32 1.442695, %v2317_v5  ;;  %v2390_v58 = vmul.f32 1.442695, %v2325_v51  ;;  %v2321_v18 = vsub.f32 0.0, %v2285_v24  ;;  %v2174_v50 = vpop.f32.mrf.mxu0 }
 0x2d9   : > { %v4727_v36 = vpop.eup %3568  ;;  %3594 = vpow2.f32 %v2384_v47  ;;  %v2288_v28 = vadd.f32 %v2166_v7, %v1952_v48  ;;  %v2376_v40 = vmul.f32 1.442695, %v2318_v33  ;;  %v2380_v1 = vmul.f32 1.442695, %v2320_v55 }
 0x2da   : > { %v4729_v19 = vpop.eup %3570  ;;  %3596 = vpow2.f32 %v2370_v63  ;;  %v2323_v4 = vsub.f32 0.0, %v2287_v10  ;;  %v2382_v61 = vmul.f32 1.442695, %v2321_v18  ;;  %v1711_v12 = vadd.f32 %v4971_v8, %v4970_v30  ;;  %v2176_v10 = vpop.f32.mrf.mxu0 }
 0x2db   : > { %v4731_v17 = vpop.eup %3572  ;;  %3598 = vpow2.f32 %v2402_v52  ;;  %v2324_v3 = vsub.f32 0.0, %v2288_v28  ;;  %v1713_v31 = vadd.f32 %v4973_v14, %v4972_v39 }
 0x2dc   : > { %v3575_v11 = vpop.eup %3574  ;;  %3600 = vpow2.f32 %v2374_v57  ;;  %v2386_v54 = vmul.f32 1.442695, %v2323_v4  ;;  %v1954_v49 = vadd.f32 %v4652_v2, %v1711_v12 }
 0x2dd   : > { %v3577_v42 = vpop.eup %3576  ;;  %2484 = vst [vmem:[%s4734_s10 + $0x40] sm:$0xff] %v3575_v11  ;;  %v4737_v37 = vadd.f32 %v3575_v11, %v3559_v26  ;;  %3602 = vpow2.f32 %v2390_v58  ;;  %v2388_v9 = vmul.f32 1.442695, %v2324_v3  ;;  %v4975_v26 = vld [vmem:[#allocation17_spill] sm:$0xff] }
 0x2de   : > { %v3579_v44 = vpop.eup %3578  ;;  %v2427_v27 = vadd.f32 1.0, %v3577_v42  ;;  %3604 = vpow2.f32 %v2376_v40  ;;  %v1717_v34 = vadd.f32 %v4619_v23, %v4975_v26  ;;  %v2290_v24 = vadd.f32 %v2170_v16, %v1954_v49 }
 0x2df   : > { %v3581_v59 = vpop.eup %3580  ;;  %2476 = vst [vmem:[%s4734_s10] sm:$0xff] %v3579_v44  ;;  %v4743_v32 = vadd.f32 %v3579_v44, %v4703_v46  ;;  %3606 = vpow2.f32 %v2380_v1  ;;  %v1715_v46 = vadd.f32 %v4606_v43, %v4974_v22  ;;  %v1955_v43 = vadd.f32 %v4652_v2, %v1713_v31 }
 0x2e0   : > { %v3583_v20 = vpop.eup %3582  ;;  %3608 = vrcp.f32 %v2427_v27  ;;  %v2419_v13 = vadd.f32 1.0, %v3581_v59  ;;  %v1958_v55 = vadd.f32 %v4668_v21, %v1717_v34  ;;  %v2326_v18 = vsub.f32 0.0, %v2290_v24 }
 0x2e1   : > { %v3585_v29 = vpop.eup %3584  ;;  %2478 = vst [vmem:[%s4734_s10 + $0x10] sm:$0xff] %v3583_v20  ;;  %v4748_v38 = vadd.f32 %v3583_v20, %v3563_v62  ;;  %3610 = vpow2.f32 %v2382_v61  ;;  %v2291_v7 = vadd.f32 %v2172_v60, %v1955_v43  ;;  %v1957_v23 = vadd.f32 %v4668_v21, %v1715_v46 }
 0x2e2   : > { %v3587_v56 = vpop.eup %3586  ;;  %3612 = vrcp.f32 %v2419_v13  ;;  %v2421_v41 = vadd.f32 1.0, %v3585_v29  ;;  %v2294_v11 = vadd.f32 %v2176_v10, %v1958_v55  ;;  %v2392_v44 = vmul.f32 1.442695, %v2326_v18 }
 0x2e3   : > { %v3589_v0 = vpop.eup %3588  ;;  %2477 = vst [vmem:[%s4734_s10 + $0x8] sm:$0xff] %v3587_v56  ;;  %v4757_v5 = vadd.f32 %v3587_v56, %v4707_v25  ;;  %3614 = vpow2.f32 %v2386_v54  ;;  %v2293_v2 = vadd.f32 %v2174_v50, %v1957_v23  ;;  %v2327_v16 = vsub.f32 0.0, %v2291_v7 }
 0x2e4   : > { %v3591_v47 = vpop.eup %3590  ;;  %3616 = vrcp.f32 %v2421_v41  ;;  %v2420_v51 = vadd.f32 1.0, %v3589_v0  ;;  %v2330_v60 = vsub.f32 0.0, %v2294_v11 }
 0x2e5   : > { %v3593_v62 = vpop.eup %3592  ;;  %v2436_v63 = vadd.f32 1.0, %v3591_v47  ;;  %3618 = vpow2.f32 %v2388_v9  ;;  %v2329_v30 = vsub.f32 0.0, %v2293_v2  ;;  %v2394_v54 = vmul.f32 1.442695, %v2327_v16 }
 0x2e6   : > { %v3595_v33 = vpop.eup %3594  ;;  %3620 = vrcp.f32 %v2420_v51  ;;  %v2422_v48 = vadd.f32 1.0, %v3593_v62  ;;  %v2400_v22 = vmul.f32 1.442695, %v2330_v60 }
 0x2e7   : > { %v3597_v52 = vpop.eup %3596  ;;  %3622 = vrcp.f32 %v2436_v63  ;;  %v2430_v25 = vadd.f32 1.0, %v3595_v33  ;;  %v2398_v13 = vmul.f32 1.442695, %v2329_v30 }
 0x2e8   : > { %v3599_v57 = vpop.eup %3598  ;;  %3624 = vrcp.f32 %v2422_v48  ;;  %v2423_v58 = vadd.f32 1.0, %v3597_v52 }
 0x2e9   : > { %v3601_v28 = vpop.eup %3600  ;;  %3626 = vrcp.f32 %v2430_v25  ;;  %v2439_v40 = vadd.f32 1.0, %v3599_v57 }
 0x2ea   : > { %v3603_v1 = vpop.eup %3602  ;;  %3628 = vrcp.f32 %v2423_v58  ;;  %v2425_v4 = vadd.f32 1.0, %v3601_v28 }
 0x2eb   : > { %v3605_v42 = vpop.eup %3604  ;;  %3630 = vrcp.f32 %v2439_v40  ;;  %v2433_v61 = vadd.f32 1.0, %v3603_v1 }
 0x2ec   : > { %v3607_v3 = vpop.eup %3606  ;;  %3632 = vrcp.f32 %v2425_v4  ;;  %v2426_v21 = vadd.f32 1.0, %v3605_v42 }
 0x2ed   : > { %v3609_v8 = vpop.eup %3608  ;;  %3634 = vrcp.f32 %v2433_v61  ;;  %v2428_v12 = vadd.f32 1.0, %v3607_v3 }
 0x2ee   : > { %v3611_v27 = vpop.eup %3610  ;;  %2487 = vst [vmem:[%s4734_s10 + $0x58] sm:$0xff] %v3609_v8  ;;  %v2499_v59 = vadd.f32 %v3609_v8, %v4725_v45  ;;  %3636 = vrcp.f32 %v2426_v21 }
 0x2ef   : > { %v3613_v20 = vpop.eup %3612  ;;  %3638 = vrcp.f32 %v2428_v12  ;;  %v2429_v39 = vadd.f32 1.0, %v3611_v27 }
 0x2f0   : > { %v3615_v14 = vpop.eup %3614  ;;  %2479 = vst [vmem:[%s4734_s10 + $0x18] sm:$0xff] %v3613_v20  ;;  %v2491_v31 = vadd.f32 %v3613_v20, %v4711_v6  ;;  %3640 = vpow2.f32 %v2392_v44 }
 0x2f1   : > { %v3617_v29 = vpop.eup %3616  ;;  %3642 = vrcp.f32 %v2429_v39  ;;  %v2431_v9 = vadd.f32 1.0, %v3615_v14 }
 0x2f2   : > { %v3619_v56 = vpop.eup %3618  ;;  %2481 = vst [vmem:[%s4734_s10 + $0x28] sm:$0xff] %v3617_v29  ;;  %v2493_v45 = vadd.f32 %v3617_v29, %v4729_v19  ;;  %3644 = vpow2.f32 %v2394_v54 }
 0x2f3   : > { %v3621_v46 = vpop.eup %3620  ;;  %3646 = vrcp.f32 %v2431_v9  ;;  %v2432_v41 = vadd.f32 1.0, %v3619_v56 }
 0x2f4   : > { %v3623_v49 = vpop.eup %3622  ;;  %2480 = vst [vmem:[%s4734_s10 + $0x20] sm:$0xff] %v3621_v46  ;;  %v2492_v6 = vadd.f32 %v3621_v46, %v4715_v15  ;;  %3648 = vpow2.f32 %v2398_v13 }
 0x2f5   : > { %v3625_v0 = vpop.eup %3624  ;;  %v2508_v26 = vadd.f32 %v3623_v49, %v4737_v37  ;;  %3650 = vrcp.f32 %v2432_v41 }
 0x2f6   : > { %v3627_v34 = vpop.eup %3626  ;;  %2482 = vst [vmem:[%s4734_s10 + $0x30] sm:$0xff] %v3625_v0  ;;  %v2494_v19 = vadd.f32 %v3625_v0, %v4719_v53  ;;  %3652 = vpow2.f32 %v2400_v22 }
 0x2f7   : > { %v3629_v50 = vpop.eup %3628  ;;  %2520 = vst [vmem:[%s4774_s18 + $0x40] sm:$0xff] %v2508_v26  ;;  %v2502_v15 = vadd.f32 %v3627_v34, %v4748_v38 }
 0x2f8   : > { %v3631_v47 = vpop.eup %3630  ;;  %2483 = vst [vmem:[%s4734_s10 + $0x38] sm:$0xff] %v3629_v50  ;;  %v2495_v37 = vadd.f32 %v3629_v50, %v4723_v35 }
 0x2f9   : > { %v3633_v51 = vpop.eup %3632  ;;  %2514 = vst [vmem:[%s4774_s18 + $0x10] sm:$0xff] %v2502_v15  ;;  %v2511_v24 = vadd.f32 %v3631_v47, %v2499_v59 }
 0x2fa   : > { %v3635_v53 = vpop.eup %3634  ;;  %2485 = vst [vmem:[%s4734_s10 + $0x48] sm:$0xff] %v3633_v51  ;;  %v2497_v43 = vadd.f32 %v3633_v51, %v4727_v36 }
 0x2fb   : > { %v3637_v62 = vpop.eup %3636  ;;  %2523 = vst [vmem:[%s4774_s18 + $0x58] sm:$0xff] %v2511_v24  ;;  %v2505_v63 = vadd.f32 %v3635_v53, %v2493_v45 }
 0x2fc   : > { %v3639_v33 = vpop.eup %3638  ;;  %2486 = vst [vmem:[%s4734_s10 + $0x50] sm:$0xff] %v3637_v62  ;;  %v2498_v38 = vadd.f32 %v3637_v62, %v4731_v17 }
 0x2fd   : > { %v3641_v48 = vpop.eup %3640  ;;  %2517 = vst [vmem:[%s4774_s18 + $0x28] sm:$0xff] %v2505_v63  ;;  %v2500_v35 = vadd.f32 %v3639_v33, %v4743_v32 }
 0x2fe   : > { %v3643_v7 = vpop.eup %3642  ;;  %v2434_v23 = vadd.f32 1.0, %v3641_v48 }
 0x2ff   : > { %v3645_v52 = vpop.eup %3644  ;;  %2512 = vst [vmem:[%s4774_s18] sm:$0xff] %v2500_v35  ;;  %v2501_v36 = vadd.f32 %v3643_v7, %v4757_v5 }
 0x300   : > { %v3647_v25 = vpop.eup %3646  ;;  %3654 = vrcp.f32 %v2434_v23  ;;  %v2435_v55 = vadd.f32 1.0, %v3645_v52 }
 0x301   : > { %v3649_v10 = vpop.eup %3648  ;;  %2513 = vst [vmem:[%s4774_s18 + $0x8] sm:$0xff] %v2501_v36  ;;  %v2503_v57 = vadd.f32 %v3647_v25, %v2491_v31 }
 0x302   : > { %v3651_v17 = vpop.eup %3650  ;;  %3656 = vrcp.f32 %v2435_v55  ;;  %v2437_v58 = vadd.f32 1.0, %v3649_v10 }
 0x303   : > { %v3653_v32 = vpop.eup %3652  ;;  %2515 = vst [vmem:[%s4774_s18 + $0x18] sm:$0xff] %v2503_v57  ;;  %v2504_v18 = vadd.f32 %v3651_v17, %v2492_v6 }
 0x304   : > { %3658 = vrcp.f32 %v2437_v58  ;;  %v2438_v2 = vadd.f32 1.0, %v3653_v32 }
 0x305   : > { %2516 = vst [vmem:[%s4774_s18 + $0x20] sm:$0xff] %v2504_v18 }
 0x306   : > { %3660 = vrcp.f32 %v2438_v2 }
 0x30d   : > { %v3655_v5 = vpop.eup %3654 }
 0x30e   : > { %v2506_v28 = vadd.f32 %v3655_v5, %v2494_v19 }
 0x30f   : > { %v3657_v40 = vpop.eup %3656 }
 0x310   : > { %2518 = vst [vmem:[%s4774_s18 + $0x30] sm:$0xff] %v2506_v28  ;;  %v2507_v1 = vadd.f32 %v3657_v40, %v2495_v37 }
 0x311   : > { %v3659_v4 = vpop.eup %3658 }
 0x312   : > { %2519 = vst [vmem:[%s4774_s18 + $0x38] sm:$0xff] %v2507_v1  ;;  %v2509_v16 = vadd.f32 %v3659_v4, %v2497_v43  ;;  %2536 = sbr.rel (!%p4056_p5) target bundleno = 819 (0x333), region = 180 }
 0x313   : > { %v3661_v11 = vpop.eup %3660 }
 0x314   : > { %2521 = vst [vmem:[%s4774_s18 + $0x48] sm:$0xff] %v2509_v16  ;;  %v2510_v42 = vadd.f32 %v3661_v11, %v2498_v38 }
 0x316   : > { %2522 = vst [vmem:[%s4774_s18 + $0x50] sm:$0xff] %v2510_v42 }
 0x317   : > { %s5001_s9 = smov (!%p2539_p2, %s2538_s9), 3 }
 0x318   : > { %s4805_s15 = sshll.u32 %s5001_s9, 9 }
 0x319   : > { %s2543_s23 = ssub.s32 1536, %s4805_s15 }
 0x31a   : > { %2544 = vsyncadd %s2525_s19, %s2543_s23  ;;  %p3005_p3 = scmp.ne.s32.totalorder %s4805_s15, 0  ;;  %s3028_s11 = smul.u32 384, %s3888_s27 }
 0x31b   : > { %s3007_s14 = sshll.u32 %s5001_s9, 3  ;;  %s2552_s30 = sshll.u32 %s4734_s10, 4  ;;  %s4819_s30 = int_to_ptr.vmem [resolvable:$true] %s2552_s30 }
 0x31c   : > { %s4817_s0 = scalar_lea.hbm %s4926_s6, %s3028_s11  ;;  %s3662_s21 = scalar_lea.vmem %s4819_s30, %s4805_s15 }
 0x31d   : > { %p3663_p6 = scmp.ne.s32.totalorder %s4819_s30, %s3662_s21  ;;  %s3967_s22 = smov [#allocation4]  }
 0x31e   : > { %s3666_s8 = sshll.u32 %s3967_s22, 4  ;;  %s3667_s8 = int_to_ptr.vmem [resolvable:$false] %s3666_s8 }
 0x31f   : > { %p3664_p7 = pnand %p3663_p6, %p3005_p3  ;;  %s3668_s16 = scalar_lea.vmem %s3667_s8, 3072 }
 0x320   : > { %p3669_p11 = scmp.lt.s32.totalorder %s4819_s30, %s3667_s8  ;;  %p3670_p12 = scmp.lt.s32.totalorder %s3668_s16, %s3662_s21 }
 0x321   : > { %p3665_p8 = pneg %p3664_p7 }
 0x322   : > { %p3671_p13 = por %p3670_p12, %p3669_p11 }
 0x324   : > { %p3672_p4 = pnand %p3671_p13, %p3665_p8 }
 0x326   : > { %3675 = shalt.err (!%p3672_p4)
}
 0x327   : > { %s3676_s10 = scalar_lea.hbm %s4817_s0, %s4805_s15  ;;  %s3680_s11 = scalar_lea.hbm %s4926_s6, 2560 }
 0x328   : > { %p3677_p0 = scmp.ne.s32.totalorder %s4817_s0, %s3676_s10  ;;  %p3681_p6 = scmp.lt.s32.totalorder %s4817_s0, %s4926_s6 }
 0x329   : > { %p3682_p7 = scmp.lt.s32.totalorder %s3680_s11, %s3676_s10 }
 0x32a   : > { %p3678_p1 = pnand %p3677_p0, %p3005_p3 }
 0x32b   : > { %p3683_p8 = por %p3682_p7, %p3681_p6 }
 0x32c   : > { %p3679_p2 = pneg %p3678_p1 }
 0x32e   : > { %p3684_p11 = pnand %p3683_p8, %p3679_p2 }
 0x330   : > { %3687 = shalt.err (!%p3684_p11)
}
 0x331   : > { %s3968_s21 = smov 384   ;;  %s3969_s22 = smov 640  }
 0x332   : > { %2558 = dma.vmem_to_hbm [thread:$0]  (%p3005_p3), %s4819_s30, %s4805_s15, %s4817_s0, %s2525_s19, %s3968_s21, %s3969_s22, %s3007_s14  }
 0x333 PF: > { %2561 = sbr.rel (!%p4056_p5) target bundleno = 853 (0x355), region = 184 }
 0x334   : > { %s2562_s8 = smul.u32 (%p4056_p5), 3, %s3888_s27 }
 0x336   : > { %s2563_s16 = ssub.s32 (%p4056_p5), 5, %s2562_s8 }
 0x337   : > { %p2564_p12 = scmp.lt.s32.totalorder (%p4056_p5), %s2563_s16, 3 }
 0x339   : > { %s5003_s16 = smov (!%p2564_p12, %s2563_s16), 3 }
 0x33a   : > { %s4854_s10 = sshll.u32 %s5003_s16, 9 }
 0x33b   : > { %s2568_s7 = ssub.s32 1536, %s4854_s10 }
 0x33c   : > { %2569 = vsyncadd %s2530_s24, %s2568_s7  ;;  %p3011_p5 = scmp.ne.s32.totalorder %s4854_s10, 0  ;;  %s3031_s12 = smul.u32 384, %s3888_s27 }
 0x33d   : > { %s3013_s19 = sshll.u32 %s5003_s16, 3  ;;  %s2577_s9 = sshll.u32 %s4774_s18, 4  ;;  %s4868_s9 = int_to_ptr.vmem [resolvable:$true] %s2577_s9 }
 0x33e   : > { %s4976_s30 = sld [smem:[#allocation28_spill]]  ;;  %s3688_s23 = scalar_lea.vmem %s4868_s9, %s4854_s10 }
 0x33f   : > { %p3689_p3 = scmp.ne.s32.totalorder %s4868_s9, %s3688_s23  ;;  %s3970_s11 = smov [#allocation6]  }
 0x340   : > { %s3692_s13 = sshll.u32 %s3970_s11, 4  ;;  %s3693_s13 = int_to_ptr.vmem [resolvable:$false] %s3692_s13 }
 0x341   : > { %p3690_p13 = pnand %p3689_p3, %p3011_p5  ;;  %s3694_s27 = scalar_lea.vmem %s3693_s13, 3072 }
 0x342   : > { %p3695_p0 = scmp.lt.s32.totalorder %s4868_s9, %s3693_s13  ;;  %p3696_p1 = scmp.lt.s32.totalorder %s3694_s27, %s3688_s23 }
 0x343   : > { %p3691_p4 = pneg %p3690_p13 }
 0x344   : > { %s4866_s0 = scalar_lea.hbm %s4976_s30, %s3031_s12  ;;  %p3697_p2 = por %p3696_p1, %p3695_p0 }
 0x346   : > { %p3698_p6 = pnand %p3697_p2, %p3691_p4 }
 0x348   : > { %3701 = shalt.err (!%p3698_p6)
}
 0x349   : > { %s3702_s18 = scalar_lea.hbm %s4866_s0, %s4854_s10  ;;  %s3706_s22 = scalar_lea.hbm %s4976_s30, 2560 }
 0x34a   : > { %p3703_p7 = scmp.ne.s32.totalorder %s4866_s0, %s3702_s18  ;;  %p3707_p12 = scmp.lt.s32.totalorder %s4866_s0, %s4976_s30 }
 0x34b   : > { %p3708_p3 = scmp.lt.s32.totalorder %s3706_s22, %s3702_s18 }
 0x34c   : > { %p3704_p8 = pnand %p3703_p7, %p3011_p5 }
 0x34d   : > { %p3709_p13 = por %p3708_p3, %p3707_p12 }
 0x34e   : > { %p3705_p11 = pneg %p3704_p8 }
 0x350   : > { %p3710_p4 = pnand %p3709_p13, %p3705_p11 }
 0x352   : > { %3713 = shalt.err (!%p3710_p4)
}
 0x353   : > { %s3971_s12 = smov 384   ;;  %s3972_s15 = smov 640  }
 0x354   : > { %2583 = dma.vmem_to_hbm [thread:$0]  (%p3011_p5), %s4868_s9, %s4854_s10, %s4866_s0, %s2530_s24, %s3971_s12, %s3972_s15, %s3013_s19  }
 0x355 PF: > { %s4977_s14 = sld [smem:[#allocation10_spill]]  ;;  %p3126_p0 = pnand %p2882_p10, %p4067_p9 }
 0x357   : > { %p3127_p1 = pneg %p3126_p0 }
 0x35b   : > { %s2592_s11 = sand.u32 1, %s4977_s14  }
 0x35c   : > { %s2593_s13 = scalar_lea.sflag [#allocation5], %s2592_s11 }
 0x35d   : > { %3867 = dma.done.wait (%p3127_p1), %s2593_s13, 1536  }
 0x35e   : > { %3869 = vsyncadd (%p3127_p1), %s2593_s13, 4294965760  ;;  %s2602_s27 = scalar_lea.sflag [#allocation7], %s2592_s11 }
 0x35f   : > { %3871 = dma.done.wait (%p3127_p1), %s2602_s27, 1536  }
 0x360   : > { %3873 = vsyncadd (%p3127_p1), %s2602_s27, 4294965760  ;;  %s24_s29 = sadd.s32 1, %s3896_s29   ;;  %s4979_s17 = sld [smem:[#allocation12_spill]] }
 0x361   : > { %p21_p2 = scmp.ge.s32.totalorder %s24_s29, 4   ;;  %s4980_s16 = sld [smem:[#allocation11_spill]] }
 0x362   : > { %s4981_s24 = smov %s3880_s25  ;;  %s4982_s25 = smov %s3884_s26 }
 0x363   : > { %s4984_s27 = smov %s3892_s28  ;;  %23 = sbr.rel (!%p21_p2) target bundleno = 9 (0x9), region = 365 }
 0x366   : > { %s4983_s26 = smov %s4979_s17 }
 0x367   : > { %s4985_s28 = smov %s4980_s16 }
 0x368   :  { %2607 = vsyncpa [#allocation5], 1 }
 0x369   :  { %2609 = vsyncpa [#allocation5 + $0x1], 1 }
 0x36a   :  { %2610 = vsyncpa [#allocation7], 1 }
 0x36b   :  { %2612 = vsyncpa [#allocation7 + $0x1], 1 }

</bundles_post_ra>
